<compile_context>
chip_gen: v6e
topology: v6e:2x2x1
jax: 0.10.0
libtpu: 0.0.40
codegen_flags: <defaults>
</compile_context>

<pallas_src>
import numpy as np
import jax
import jax.numpy as jnp
from jax.experimental import pallas as pl
from jax.experimental.pallas import tpu as pltpu


def _make_kernel(Bb, C, CH, H, W):
    HW = H * W

    def kernel(spt_ref, qry_ref, w1t_ref, w2t_ref, wmasks_ref, x2_ref, x1_ref):
        s = spt_ref[...]            # (Bb, C, HW) f32
        q = qry_ref[...]            # (Bb, C, HW) f32
        w1t = w1t_ref[...]          # (C, CH)  fc1 weight (transposed 1x1 conv)
        w2t = w2t_ref[...]          # (CH, C)  fc2 weight (transposed 1x1 conv)

        # ---------- Channel attention: one batched MLP over all 4*Bb pooled vectors ----------
        pools = jnp.concatenate(
            [jnp.mean(s, axis=2), jnp.max(s, axis=2),
             jnp.mean(q, axis=2), jnp.max(q, axis=2)], axis=0)              # (4*Bb, C)
        hid = jnp.maximum(
            jnp.dot(pools, w1t, preferred_element_type=jnp.float32), 0.0)   # (4*Bb, CH)
        ca = jnp.dot(hid, w2t, preferred_element_type=jnp.float32)          # (4*Bb, C)
        cw_s = jnp.maximum(ca[0 * Bb:1 * Bb] + ca[1 * Bb:2 * Bb], 0.0)       # CA(spt) (Bb, C)
        cw_q = jnp.maximum(ca[2 * Bb:3 * Bb] + ca[3 * Bb:4 * Bb], 0.0)       # CA(qry) (Bb, C)

        # ---------- Spatial attention: shared 3x3 conv (pad=1) on flattened maps -------------
        mean_maps = jnp.concatenate(
            [jnp.mean(s, axis=1), jnp.mean(q, axis=1)], axis=0)             # (2*Bb, HW)
        max_maps = jnp.concatenate(
            [jnp.max(s, axis=1), jnp.max(q, axis=1)], axis=0)               # (2*Bb, HW)

        # Center tap (di=dj=0, t=4) is always valid: it initializes the accumulator directly
        # (its pre-weighted mask is the conv weight broadcast over all positions).
        acc = (wmasks_ref[4:5, :] * mean_maps
               + wmasks_ref[13:14, :] * max_maps)                           # (2*Bb, HW)
        for di in (-1, 0, 1):
            for dj in (-1, 0, 1):
                if di == 0 and dj == 0:
                    continue
                t = (di + 1) * 3 + (dj + 1)
                off = di * W + dj
                sh = (-off) % HW                        # t[:, k] = m[:, (k + off) % HW]
                rm = pltpu.roll(mean_maps, shift=sh, axis=1)    # XLU lane rotate
                rx = pltpu.roll(max_maps, shift=sh, axis=1)
                acc = acc + wmasks_ref[t:t + 1, :] * rm + wmasks_ref[9 + t:10 + t, :] * rx
        sa = jnp.maximum(acc, 0.0)                                          # (2*Bb, HW)
        sa_s = sa[0:Bb]                                                     # SA(spt)
        sa_q = sa[Bb:2 * Bb]                                                # SA(qry)

        # ---------- Gate and write outputs (lane-dense (Bb, C, HW) stores) -------------------
        x1_ref[...] = q * cw_s[:, :, None] * sa_s[:, None, :]
        x2_ref[...] = s * cw_q[:, :, None] * sa_q[:, None, :]

    return kernel


def _is_multicore_tpu():
    """True on chips with 2 TensorCores (v7x), where grid>=2 pays off."""
    try:
        kind = jax.devices()[0].device_kind.lower()
    except Exception:
        return False
    return ("v7" in kind) or ("7x" in kind)


def _pick_batch_block(B, C, HW, *, bytes_per_elem=4, target_block_bytes=4 << 20,
                      want_two_cores=False):
    """Largest divisor of B fitting the slab budget, preferring multiples of 8.

    grid>=2 is only enforced when the chip actually has 2 TensorCores (v7x); on
    single-TC chips (v5e/v6e) extra grid steps just add per-step overhead.
    """
    per_sample = C * HW * bytes_per_elem
    cap = max(1, min(B, target_block_bytes // per_sample))
    if want_two_cores and B >= 2:
        cap = min(cap, max(1, B // 2))
    best = 1
    best_aligned = None
    for cand in range(1, cap + 1):
        if B % cand == 0:
            best = cand
            if cand % 8 == 0:
                best_aligned = cand
    return best_aligned if best_aligned is not None else best


def _tap_masks(H, W):
    """(9, H*W) validity masks for the 3x3 'SAME' conv taps (built at trace time)."""
    r = np.arange(H)[:, None]
    c = np.arange(W)[None, :]
    masks = np.zeros((9, H, W), np.float32)
    t = 0
    for di in (-1, 0, 1):
        for dj in (-1, 0, 1):
            ok = (r + di >= 0) & (r + di < H) & (c + dj >= 0) & (c + dj < W)
            masks[t] = ok.astype(np.float32)
            t += 1
    return masks.reshape(9, H * W)


@jax.jit
def match_block_forward(spt, qry, w1, w2, wsa):
    B, C, H, W = spt.shape
    CH = w1.shape[0]
    HW = H * W

    spt2 = spt.reshape(B, C, HW).astype(jnp.float32)
    qry2 = qry.reshape(B, C, HW).astype(jnp.float32)
    w1t = jnp.asarray(w1, jnp.float32).T                    # (C, CH)
    w2t = jnp.asarray(w2, jnp.float32).T                    # (CH, C)

    # Fold the 3x3 conv weights into the boundary-validity masks: (18, HW) pre-weighted taps
    # (rows 0..8 = mean-channel taps, rows 9..17 = max-channel taps).
    wsa_flat = jnp.asarray(wsa, jnp.float32).reshape(18)
    masks = jnp.asarray(_tap_masks(H, W))                   # (9, HW)
    wmasks = jnp.concatenate([wsa_flat[:9, None] * masks,
                              wsa_flat[9:, None] * masks], axis=0)   # (18, HW)

    Bb = _pick_batch_block(B, C, HW, want_two_cores=_is_multicore_tpu())
    grid = (B // Bb,)

    # Resident footprint: 4 slabs (2 in + 2 out) x 2 pipeline buffers, plus small constants.
    slab_bytes = Bb * C * HW * 4
    resident = 8 * slab_bytes + 2 * (18 * HW + 2 * C * CH) * 4
    vmem_limit = int(min(48 << 20, max(32 << 20, resident + (4 << 20))))

    kernel = _make_kernel(Bb, C, CH, H, W)
    slab = pl.BlockSpec((Bb, C, HW), lambda b: (b, 0, 0))

    x2, x1 = pl.pallas_call(
        kernel,
        out_shape=(
            jax.ShapeDtypeStruct((B, C, HW), jnp.float32),
            jax.ShapeDtypeStruct((B, C, HW), jnp.float32),
        ),
        grid=grid,
        in_specs=[
            slab,                                                # spt
            slab,                                                # qry
            pl.BlockSpec((C, CH), lambda b: (0, 0)),             # fc1 weight (transposed)
            pl.BlockSpec((CH, C), lambda b: (0, 0)),             # fc2 weight (transposed)
            pl.BlockSpec((18, HW), lambda b: (0, 0)),            # pre-weighted 3x3 conv masks
        ],
        out_specs=(slab, slab),
        compiler_params=pltpu.CompilerParams(
            dimension_semantics=("parallel",),
            vmem_limit_bytes=vmem_limit,
        ),
    )(spt2, qry2, w1t, w2t, wmasks)
    return x2.reshape(B, C, H, W), x1.reshape(B, C, H, W)


# ----------------------------- pure-JAX reference -------------------------------------
def _reference(spt, qry, w1, w2, wsa):
    def ca(x):
        avg = jnp.mean(x, axis=(2, 3))                    # (B, C)
        mx = jnp.max(x, axis=(2, 3))                      # (B, C)

        def mlp(v):
            h = jnp.maximum(v @ w1.T, 0.0)                # (B, CH)
            return h @ w2.T                               # (B, C)

        return jnp.maximum(mlp(avg) + mlp(mx), 0.0)[:, :, None, None]

    def sa(x):
        mean_c = jnp.mean(x, axis=1, keepdims=True)
        max_c = jnp.max(x, axis=1, keepdims=True)
        inp = jnp.concatenate([mean_c, max_c], axis=1)    # (B, 2, H, W)
        out = jax.lax.conv_general_dilated(
            inp, wsa[None], window_strides=(1, 1), padding="SAME",
            dimension_numbers=("NCHW", "OIHW", "NCHW"))
        return jnp.maximum(out, 0.0)                      # (B, 1, H, W)

    c1 = ca(spt)
    c2 = ca(qry)
    x1 = qry * c1 * sa(spt)
    x2 = spt * c2 * sa(qry)
    return x2, x1


if __name__ == "__main__":
    B, C, H, W = 2, 40, 16, 16     # C // ratio(=10) = 4 hidden channels in ChannelAttention
    CH = C // 10

    key = jax.random.PRNGKey(0)
    k1, k2, k3, k4, k5 = jax.random.split(key, 5)
    spt = jax.random.normal(k1, (B, C, H, W), jnp.float32)
    qry = jax.random.normal(k2, (B, C, H, W), jnp.float32)
    # Deterministic synthetic weights (shared ChannelAttention / SpatialAttention modules).
    w1 = jax.random.normal(k3, (CH, C), jnp.float32) * 0.1    # fc1: Conv2d(C, C//10, 1, bias=False)
    w2 = jax.random.normal(k4, (C, CH), jnp.float32) * 0.1    # fc2: Conv2d(C//10, C, 1, bias=False)
    wsa = jax.random.normal(k5, (2, 3, 3), jnp.float32) * 0.1  # SpatialAttention conv1 (1,2,3,3)

    x2, x1 = match_block_forward(spt, qry, w1, w2, wsa)
    jax.block_until_ready((x2, x1))

    r2, r1 = _reference(spt, qry, w1, w2, wsa)
    assert jnp.allclose(x2, r2, rtol=1e-3, atol=1e-3), "x2 mismatch"
    assert jnp.allclose(x1, r1, rtol=1e-3, atol=1e-3), "x1 mismatch"

    print("KERNEL_OK")
</pallas_src>

<mosaic_0001>
module attributes {stable_mosaic.version = 11 : i64} {
  func.func @kernel(%arg0: i32, %arg1: memref<2x40x256xf32, #tpu.memory_space<vmem>>, %arg2: memref<2x40x256xf32, #tpu.memory_space<vmem>>, %arg3: memref<40x4xf32, #tpu.memory_space<vmem>>, %arg4: memref<4x40xf32, #tpu.memory_space<vmem>>, %arg5: memref<18x256xf32, #tpu.memory_space<vmem>>, %arg6: memref<2x40x256xf32, #tpu.memory_space<vmem>>, %arg7: memref<2x40x256xf32, #tpu.memory_space<vmem>>) attributes {dimension_semantics = [#tpu.dimension_semantics<parallel>], iteration_bounds = array<i64: 1>, scalar_prefetch = 0 : i64, scratch_operands = 0 : i64, tpu.core_type = #tpu.core_type<tc>, window_params = [{transform_indices = @transform_0, window_bounds = array<i64: 2, 40, 256>}, {transform_indices = @transform_1, window_bounds = array<i64: 2, 40, 256>}, {pipeline_mode = #tpu.pipeline_mode<synchronous>, transform_indices = @transform_2, window_bounds = array<i64: 40, 4>}, {pipeline_mode = #tpu.pipeline_mode<synchronous>, transform_indices = @transform_3, window_bounds = array<i64: 4, 40>}, {pipeline_mode = #tpu.pipeline_mode<synchronous>, transform_indices = @transform_4, window_bounds = array<i64: 18, 256>}, {transform_indices = @transform_5, window_bounds = array<i64: 2, 40, 256>}, {transform_indices = @transform_6, window_bounds = array<i64: 2, 40, 256>}]} {
    %c0 = arith.constant 0 : index
    %c0_0 = arith.constant 0 : index
    %c0_1 = arith.constant 0 : index
    %0 = vector.load %arg1[%c0, %c0_0, %c0_1] : memref<2x40x256xf32, #tpu.memory_space<vmem>>, vector<2x40x256xf32>
    %c0_2 = arith.constant 0 : index
    %c0_3 = arith.constant 0 : index
    %c0_4 = arith.constant 0 : index
    %1 = vector.load %arg2[%c0_2, %c0_3, %c0_4] : memref<2x40x256xf32, #tpu.memory_space<vmem>>, vector<2x40x256xf32>
    %c0_5 = arith.constant 0 : index
    %c0_6 = arith.constant 0 : index
    %2 = vector.load %arg3[%c0_5, %c0_6] : memref<40x4xf32, #tpu.memory_space<vmem>>, vector<40x4xf32>
    %c0_7 = arith.constant 0 : index
    %c0_8 = arith.constant 0 : index
    %3 = vector.load %arg4[%c0_7, %c0_8] : memref<4x40xf32, #tpu.memory_space<vmem>>, vector<4x40xf32>
    %cst = arith.constant dense<0.000000e+00> : vector<2x40xf32>
    %4 = vector.multi_reduction <add>, %0, %cst [2] : vector<2x40x256xf32> to vector<2x40xf32>
    %cst_9 = arith.constant 2.560000e+02 : f32
    %5 = vector.broadcast %cst_9 : f32 to vector<2x40xf32>
    %6 = arith.divf %4, %5 : vector<2x40xf32>
    %cst_10 = arith.constant dense<0xFF800000> : vector<2x40xf32>
    %7 = vector.multi_reduction <maximumf>, %0, %cst_10 [2] : vector<2x40x256xf32> to vector<2x40xf32>
    %cst_11 = arith.constant dense<0.000000e+00> : vector<2x40xf32>
    %8 = vector.multi_reduction <add>, %1, %cst_11 [2] : vector<2x40x256xf32> to vector<2x40xf32>
    %cst_12 = arith.constant 2.560000e+02 : f32
    %9 = vector.broadcast %cst_12 : f32 to vector<2x40xf32>
    %10 = arith.divf %8, %9 : vector<2x40xf32>
    %cst_13 = arith.constant dense<0xFF800000> : vector<2x40xf32>
    %11 = vector.multi_reduction <maximumf>, %1, %cst_13 [2] : vector<2x40x256xf32> to vector<2x40xf32>
    %12 = tpu.concatenate %6, %7, %10, %11 in 0 : vector<2x40xf32>, vector<2x40xf32>, vector<2x40xf32>, vector<2x40xf32> -> vector<8x40xf32>
    %cst_14 = arith.constant dense<0.000000e+00> : vector<8x4xf32>
    %13 = tpu.matmul %12, %2, %cst_14 {dimension_numbers = #tpu.dot_dimension_numbers<[1], [0], [0], [1], [0, 0, 1, 1], [], []>} : vector<8x40xf32>, vector<40x4xf32>, vector<8x4xf32> -> vector<8x4xf32>
    %cst_15 = arith.constant 0.000000e+00 : f32
    %14 = vector.broadcast %cst_15 : f32 to vector<8x4xf32>
    %15 = arith.maximumf %13, %14 : vector<8x4xf32>
    %cst_16 = arith.constant dense<0.000000e+00> : vector<8x40xf32>
    %16 = tpu.matmul %15, %3, %cst_16 {dimension_numbers = #tpu.dot_dimension_numbers<[1], [0], [0], [1], [0, 0, 1, 1], [], []>} : vector<8x4xf32>, vector<4x40xf32>, vector<8x40xf32> -> vector<8x40xf32>
    %17 = vector.extract_strided_slice %16 {offsets = [0, 0], sizes = [2, 40], strides = [1, 1]} : vector<8x40xf32> to vector<2x40xf32>
    %18 = vector.extract_strided_slice %16 {offsets = [2, 0], sizes = [2, 40], strides = [1, 1]} : vector<8x40xf32> to vector<2x40xf32>
    %19 = arith.addf %17, %18 : vector<2x40xf32>
    %cst_17 = arith.constant 0.000000e+00 : f32
    %20 = vector.broadcast %cst_17 : f32 to vector<2x40xf32>
    %21 = arith.maximumf %19, %20 : vector<2x40xf32>
    %22 = vector.extract_strided_slice %16 {offsets = [4, 0], sizes = [2, 40], strides = [1, 1]} : vector<8x40xf32> to vector<2x40xf32>
    %23 = vector.extract_strided_slice %16 {offsets = [6, 0], sizes = [2, 40], strides = [1, 1]} : vector<8x40xf32> to vector<2x40xf32>
    %24 = arith.addf %22, %23 : vector<2x40xf32>
    %cst_18 = arith.constant 0.000000e+00 : f32
    %25 = vector.broadcast %cst_18 : f32 to vector<2x40xf32>
    %26 = arith.maximumf %24, %25 : vector<2x40xf32>
    %cst_19 = arith.constant dense<0.000000e+00> : vector<2x256xf32>
    %27 = vector.multi_reduction <add>, %0, %cst_19 [1] : vector<2x40x256xf32> to vector<2x256xf32>
    %cst_20 = arith.constant 4.000000e+01 : f32
    %28 = vector.broadcast %cst_20 : f32 to vector<2x256xf32>
    %29 = arith.divf %27, %28 : vector<2x256xf32>
    %cst_21 = arith.constant dense<0.000000e+00> : vector<2x256xf32>
    %30 = vector.multi_reduction <add>, %1, %cst_21 [1] : vector<2x40x256xf32> to vector<2x256xf32>
    %cst_22 = arith.constant 4.000000e+01 : f32
    %31 = vector.broadcast %cst_22 : f32 to vector<2x256xf32>
    %32 = arith.divf %30, %31 : vector<2x256xf32>
    %33 = tpu.concatenate %29, %32 in 0 : vector<2x256xf32>, vector<2x256xf32> -> vector<4x256xf32>
    %cst_23 = arith.constant dense<0xFF800000> : vector<2x256xf32>
    %34 = vector.multi_reduction <maximumf>, %0, %cst_23 [1] : vector<2x40x256xf32> to vector<2x256xf32>
    %cst_24 = arith.constant dense<0xFF800000> : vector<2x256xf32>
    %35 = vector.multi_reduction <maximumf>, %1, %cst_24 [1] : vector<2x40x256xf32> to vector<2x256xf32>
    %36 = tpu.concatenate %34, %35 in 0 : vector<2x256xf32>, vector<2x256xf32> -> vector<4x256xf32>
    %c4 = arith.constant 4 : index
    %c0_25 = arith.constant 0 : index
    %37 = vector.load %arg5[%c4, %c0_25] : memref<18x256xf32, #tpu.memory_space<vmem>>, vector<1x256xf32>
    %38 = vector.broadcast %37 : vector<1x256xf32> to vector<4x256xf32>
    %39 = arith.mulf %38, %33 : vector<4x256xf32>
    %c13 = arith.constant 13 : index
    %c0_26 = arith.constant 0 : index
    %40 = vector.load %arg5[%c13, %c0_26] : memref<18x256xf32, #tpu.memory_space<vmem>>, vector<1x256xf32>
    %41 = vector.broadcast %40 : vector<1x256xf32> to vector<4x256xf32>
    %42 = arith.mulf %41, %36 : vector<4x256xf32>
    %43 = arith.addf %39, %42 : vector<4x256xf32>
    %c17_i32 = arith.constant 17 : i32
    %44 = tpu.dynamic_rotate %33 by %c17_i32 dim 1 : vector<4x256xf32>, i32 -> vector<4x256xf32>
    %c17_i32_27 = arith.constant 17 : i32
    %45 = tpu.dynamic_rotate %36 by %c17_i32_27 dim 1 : vector<4x256xf32>, i32 -> vector<4x256xf32>
    %c0_28 = arith.constant 0 : index
    %c0_29 = arith.constant 0 : index
    %46 = vector.load %arg5[%c0_28, %c0_29] : memref<18x256xf32, #tpu.memory_space<vmem>>, vector<1x256xf32>
    %47 = vector.broadcast %46 : vector<1x256xf32> to vector<4x256xf32>
    %48 = arith.mulf %47, %44 : vector<4x256xf32>
    %49 = arith.addf %43, %48 : vector<4x256xf32>
    %c9 = arith.constant 9 : index
    %c0_30 = arith.constant 0 : index
    %50 = vector.load %arg5[%c9, %c0_30] : memref<18x256xf32, #tpu.memory_space<vmem>>, vector<1x256xf32>
    %51 = vector.broadcast %50 : vector<1x256xf32> to vector<4x256xf32>
    %52 = arith.mulf %51, %45 : vector<4x256xf32>
    %53 = arith.addf %49, %52 : vector<4x256xf32>
    %c16_i32 = arith.constant 16 : i32
    %54 = tpu.dynamic_rotate %33 by %c16_i32 dim 1 : vector<4x256xf32>, i32 -> vector<4x256xf32>
    %c16_i32_31 = arith.constant 16 : i32
    %55 = tpu.dynamic_rotate %36 by %c16_i32_31 dim 1 : vector<4x256xf32>, i32 -> vector<4x256xf32>
    %c1 = arith.constant 1 : index
    %c0_32 = arith.constant 0 : index
    %56 = vector.load %arg5[%c1, %c0_32] : memref<18x256xf32, #tpu.memory_space<vmem>>, vector<1x256xf32>
    %57 = vector.broadcast %56 : vector<1x256xf32> to vector<4x256xf32>
    %58 = arith.mulf %57, %54 : vector<4x256xf32>
    %59 = arith.addf %53, %58 : vector<4x256xf32>
    %c10 = arith.constant 10 : index
    %c0_33 = arith.constant 0 : index
    %60 = vector.load %arg5[%c10, %c0_33] : memref<18x256xf32, #tpu.memory_space<vmem>>, vector<1x256xf32>
    %61 = vector.broadcast %60 : vector<1x256xf32> to vector<4x256xf32>
    %62 = arith.mulf %61, %55 : vector<4x256xf32>
    %63 = arith.addf %59, %62 : vector<4x256xf32>
    %c15_i32 = arith.constant 15 : i32
    %64 = tpu.dynamic_rotate %33 by %c15_i32 dim 1 : vector<4x256xf32>, i32 -> vector<4x256xf32>
    %c15_i32_34 = arith.constant 15 : i32
    %65 = tpu.dynamic_rotate %36 by %c15_i32_34 dim 1 : vector<4x256xf32>, i32 -> vector<4x256xf32>
    %c2 = arith.constant 2 : index
    %c0_35 = arith.constant 0 : index
    %66 = vector.load %arg5[%c2, %c0_35] : memref<18x256xf32, #tpu.memory_space<vmem>>, vector<1x256xf32>
    %67 = vector.broadcast %66 : vector<1x256xf32> to vector<4x256xf32>
    %68 = arith.mulf %67, %64 : vector<4x256xf32>
    %69 = arith.addf %63, %68 : vector<4x256xf32>
    %c11 = arith.constant 11 : index
    %c0_36 = arith.constant 0 : index
    %70 = vector.load %arg5[%c11, %c0_36] : memref<18x256xf32, #tpu.memory_space<vmem>>, vector<1x256xf32>
    %71 = vector.broadcast %70 : vector<1x256xf32> to vector<4x256xf32>
    %72 = arith.mulf %71, %65 : vector<4x256xf32>
    %73 = arith.addf %69, %72 : vector<4x256xf32>
    %c1_i32 = arith.constant 1 : i32
    %74 = tpu.dynamic_rotate %33 by %c1_i32 dim 1 : vector<4x256xf32>, i32 -> vector<4x256xf32>
    %c1_i32_37 = arith.constant 1 : i32
    %75 = tpu.dynamic_rotate %36 by %c1_i32_37 dim 1 : vector<4x256xf32>, i32 -> vector<4x256xf32>
    %c3 = arith.constant 3 : index
    %c0_38 = arith.constant 0 : index
    %76 = vector.load %arg5[%c3, %c0_38] : memref<18x256xf32, #tpu.memory_space<vmem>>, vector<1x256xf32>
    %77 = vector.broadcast %76 : vector<1x256xf32> to vector<4x256xf32>
    %78 = arith.mulf %77, %74 : vector<4x256xf32>
    %79 = arith.addf %73, %78 : vector<4x256xf32>
    %c12 = arith.constant 12 : index
    %c0_39 = arith.constant 0 : index
    %80 = vector.load %arg5[%c12, %c0_39] : memref<18x256xf32, #tpu.memory_space<vmem>>, vector<1x256xf32>
    %81 = vector.broadcast %80 : vector<1x256xf32> to vector<4x256xf32>
    %82 = arith.mulf %81, %75 : vector<4x256xf32>
    %83 = arith.addf %79, %82 : vector<4x256xf32>
    %c255_i32 = arith.constant 255 : i32
    %84 = tpu.dynamic_rotate %33 by %c255_i32 dim 1 : vector<4x256xf32>, i32 -> vector<4x256xf32>
    %c255_i32_40 = arith.constant 255 : i32
    %85 = tpu.dynamic_rotate %36 by %c255_i32_40 dim 1 : vector<4x256xf32>, i32 -> vector<4x256xf32>
    %c5 = arith.constant 5 : index
    %c0_41 = arith.constant 0 : index
    %86 = vector.load %arg5[%c5, %c0_41] : memref<18x256xf32, #tpu.memory_space<vmem>>, vector<1x256xf32>
    %87 = vector.broadcast %86 : vector<1x256xf32> to vector<4x256xf32>
    %88 = arith.mulf %87, %84 : vector<4x256xf32>
    %89 = arith.addf %83, %88 : vector<4x256xf32>
    %c14 = arith.constant 14 : index
    %c0_42 = arith.constant 0 : index
    %90 = vector.load %arg5[%c14, %c0_42] : memref<18x256xf32, #tpu.memory_space<vmem>>, vector<1x256xf32>
    %91 = vector.broadcast %90 : vector<1x256xf32> to vector<4x256xf32>
    %92 = arith.mulf %91, %85 : vector<4x256xf32>
    %93 = arith.addf %89, %92 : vector<4x256xf32>
    %c241_i32 = arith.constant 241 : i32
    %94 = tpu.dynamic_rotate %33 by %c241_i32 dim 1 : vector<4x256xf32>, i32 -> vector<4x256xf32>
    %c241_i32_43 = arith.constant 241 : i32
    %95 = tpu.dynamic_rotate %36 by %c241_i32_43 dim 1 : vector<4x256xf32>, i32 -> vector<4x256xf32>
    %c6 = arith.constant 6 : index
    %c0_44 = arith.constant 0 : index
    %96 = vector.load %arg5[%c6, %c0_44] : memref<18x256xf32, #tpu.memory_space<vmem>>, vector<1x256xf32>
    %97 = vector.broadcast %96 : vector<1x256xf32> to vector<4x256xf32>
    %98 = arith.mulf %97, %94 : vector<4x256xf32>
    %99 = arith.addf %93, %98 : vector<4x256xf32>
    %c15 = arith.constant 15 : index
    %c0_45 = arith.constant 0 : index
    %100 = vector.load %arg5[%c15, %c0_45] : memref<18x256xf32, #tpu.memory_space<vmem>>, vector<1x256xf32>
    %101 = vector.broadcast %100 : vector<1x256xf32> to vector<4x256xf32>
    %102 = arith.mulf %101, %95 : vector<4x256xf32>
    %103 = arith.addf %99, %102 : vector<4x256xf32>
    %c240_i32 = arith.constant 240 : i32
    %104 = tpu.dynamic_rotate %33 by %c240_i32 dim 1 : vector<4x256xf32>, i32 -> vector<4x256xf32>
    %c240_i32_46 = arith.constant 240 : i32
    %105 = tpu.dynamic_rotate %36 by %c240_i32_46 dim 1 : vector<4x256xf32>, i32 -> vector<4x256xf32>
    %c7 = arith.constant 7 : index
    %c0_47 = arith.constant 0 : index
    %106 = vector.load %arg5[%c7, %c0_47] : memref<18x256xf32, #tpu.memory_space<vmem>>, vector<1x256xf32>
    %107 = vector.broadcast %106 : vector<1x256xf32> to vector<4x256xf32>
    %108 = arith.mulf %107, %104 : vector<4x256xf32>
    %109 = arith.addf %103, %108 : vector<4x256xf32>
    %c16 = arith.constant 16 : index
    %c0_48 = arith.constant 0 : index
    %110 = vector.load %arg5[%c16, %c0_48] : memref<18x256xf32, #tpu.memory_space<vmem>>, vector<1x256xf32>
    %111 = vector.broadcast %110 : vector<1x256xf32> to vector<4x256xf32>
    %112 = arith.mulf %111, %105 : vector<4x256xf32>
    %113 = arith.addf %109, %112 : vector<4x256xf32>
    %c239_i32 = arith.constant 239 : i32
    %114 = tpu.dynamic_rotate %33 by %c239_i32 dim 1 : vector<4x256xf32>, i32 -> vector<4x256xf32>
    %c239_i32_49 = arith.constant 239 : i32
    %115 = tpu.dynamic_rotate %36 by %c239_i32_49 dim 1 : vector<4x256xf32>, i32 -> vector<4x256xf32>
    %c8 = arith.constant 8 : index
    %c0_50 = arith.constant 0 : index
    %116 = vector.load %arg5[%c8, %c0_50] : memref<18x256xf32, #tpu.memory_space<vmem>>, vector<1x256xf32>
    %117 = vector.broadcast %116 : vector<1x256xf32> to vector<4x256xf32>
    %118 = arith.mulf %117, %114 : vector<4x256xf32>
    %119 = arith.addf %113, %118 : vector<4x256xf32>
    %c17 = arith.constant 17 : index
    %c0_51 = arith.constant 0 : index
    %120 = vector.load %arg5[%c17, %c0_51] : memref<18x256xf32, #tpu.memory_space<vmem>>, vector<1x256xf32>
    %121 = vector.broadcast %120 : vector<1x256xf32> to vector<4x256xf32>
    %122 = arith.mulf %121, %115 : vector<4x256xf32>
    %123 = arith.addf %119, %122 : vector<4x256xf32>
    %cst_52 = arith.constant 0.000000e+00 : f32
    %124 = vector.broadcast %cst_52 : f32 to vector<4x256xf32>
    %125 = arith.maximumf %123, %124 : vector<4x256xf32>
    %126 = vector.extract_strided_slice %125 {offsets = [0, 0], sizes = [2, 256], strides = [1, 1]} : vector<4x256xf32> to vector<2x256xf32>
    %127 = vector.extract_strided_slice %125 {offsets = [2, 0], sizes = [2, 256], strides = [1, 1]} : vector<4x256xf32> to vector<2x256xf32>
    %128 = vector.shape_cast %21 : vector<2x40xf32> to vector<2x40x1xf32>
    %129 = vector.broadcast %128 : vector<2x40x1xf32> to vector<2x40x256xf32>
    %130 = arith.mulf %1, %129 : vector<2x40x256xf32>
    %131 = vector.shape_cast %126 : vector<2x256xf32> to vector<2x1x256xf32>
    %132 = vector.broadcast %131 : vector<2x1x256xf32> to vector<2x40x256xf32>
    %133 = arith.mulf %130, %132 : vector<2x40x256xf32>
    %c0_53 = arith.constant 0 : index
    %c0_54 = arith.constant 0 : index
    %c0_55 = arith.constant 0 : index
    %134 = vector.load %arg7[%c0_53, %c0_54, %c0_55] : memref<2x40x256xf32, #tpu.memory_space<vmem>>, vector<2x40x256xf32>
    tpu.vector_store %arg7[%c0_53, %c0_54, %c0_55], %133 {strides = array<i32>} : memref<2x40x256xf32, #tpu.memory_space<vmem>>, vector<2x40x256xf32>,
    %135 = vector.shape_cast %26 : vector<2x40xf32> to vector<2x40x1xf32>
    %136 = vector.broadcast %135 : vector<2x40x1xf32> to vector<2x40x256xf32>
    %137 = arith.mulf %0, %136 : vector<2x40x256xf32>
    %138 = vector.shape_cast %127 : vector<2x256xf32> to vector<2x1x256xf32>
    %139 = vector.broadcast %138 : vector<2x1x256xf32> to vector<2x40x256xf32>
    %140 = arith.mulf %137, %139 : vector<2x40x256xf32>
    %c0_56 = arith.constant 0 : index
    %c0_57 = arith.constant 0 : index
    %c0_58 = arith.constant 0 : index
    %141 = vector.load %arg6[%c0_56, %c0_57, %c0_58] : memref<2x40x256xf32, #tpu.memory_space<vmem>>, vector<2x40x256xf32>
    tpu.vector_store %arg6[%c0_56, %c0_57, %c0_58], %140 {strides = array<i32>} : memref<2x40x256xf32, #tpu.memory_space<vmem>>, vector<2x40x256xf32>,
    return
  }
  func.func @transform_0(%arg0: i32) -> (i32, i32, i32) {
    %c0_i32 = arith.constant 0 : i32
    %c0_i32_0 = arith.constant 0 : i32
    %c0_i32_1 = arith.constant 0 : i32
    return %arg0, %c0_i32, %c0_i32_0 : i32, i32, i32
  }
  func.func @transform_1(%arg0: i32) -> (i32, i32, i32) {
    %c0_i32 = arith.constant 0 : i32
    %c0_i32_0 = arith.constant 0 : i32
    %c0_i32_1 = arith.constant 0 : i32
    return %arg0, %c0_i32, %c0_i32_0 : i32, i32, i32
  }
  func.func @transform_2(%arg0: i32) -> (i32, i32) {
    %c0_i32 = arith.constant 0 : i32
    %c0_i32_0 = arith.constant 0 : i32
    %c0_i32_1 = arith.constant 0 : i32
    return %c0_i32, %c0_i32_0 : i32, i32
  }
  func.func @transform_3(%arg0: i32) -> (i32, i32) {
    %c0_i32 = arith.constant 0 : i32
    %c0_i32_0 = arith.constant 0 : i32
    %c0_i32_1 = arith.constant 0 : i32
    return %c0_i32, %c0_i32_0 : i32, i32
  }
  func.func @transform_4(%arg0: i32) -> (i32, i32) {
    %c0_i32 = arith.constant 0 : i32
    %c0_i32_0 = arith.constant 0 : i32
    %c0_i32_1 = arith.constant 0 : i32
    return %c0_i32, %c0_i32_0 : i32, i32
  }
  func.func @transform_5(%arg0: i32) -> (i32, i32, i32) {
    %c0_i32 = arith.constant 0 : i32
    %c0_i32_0 = arith.constant 0 : i32
    %c0_i32_1 = arith.constant 0 : i32
    return %arg0, %c0_i32, %c0_i32_0 : i32, i32, i32
  }
  func.func @transform_6(%arg0: i32) -> (i32, i32, i32) {
    %c0_i32 = arith.constant 0 : i32
    %c0_i32_0 = arith.constant 0 : i32
    %c0_i32_1 = arith.constant 0 : i32
    return %arg0, %c0_i32, %c0_i32_0 : i32, i32, i32
  }
}

</mosaic_0001>

<bundles_post_ra>
// kernel: mul.9
= control target key start
LH: loop header
LB: loop body
LE: loop exit
PB: predicated region body
PF: predicated region fallthrough
CT: control target
= control target key end

     0   :  { %vm8_vm0 = vcmask 23552   ;;  %s33_s8 = smov 3   ;;  %vm14_vm1 = vcmask 72752   ;;  %vm20_vm2 = vcmask 48152   ;;  %s50_s0 = inlined_call_operand.vmem [shape: f32[3,3], index: 0, kind: input, shape index: {}]   ;;  %s51_s1 = inlined_call_operand.vmem [shape: f32[9], index: 1, kind: output, shape index: {}]  }
   0x1   :  { %v5_v0 = vld [vmem:[%s50_s0] sm:$0xf]  ;;  %s32_s0 = smov 6  }
   0x2   :  { %6 = vst [vmem:[#allocation1] sm:$0xf] %v5_v0 }
   0x9   :  { %v11_v1 = vld [vmem:[#allocation1 + $0x2] sm:$0x1]   ;;  %v7_v2 = vld [vmem:[#allocation1] sm:$0x1]   ;;  %v17_v3 = vld [vmem:[#allocation1 + $0x1] sm:$0x1]  }
   0xa   :  { %12 = vrot.lane.b32.xlu0 %v11_v1, %s32_s0  ;;  %9 = vst.msk [vmem:[#allocation0] sm:$0x1] %vm8_vm0, %v7_v2  }
   0xe   :  { %18 = vrot.lane.b32.xlu0 %v17_v3, %s33_s8 }
  0x7c   :  { %v13_v4 = vpop.permute.xlu0 %12  }
  0x7d   :  { %15 = vst.msk [vmem:[#allocation0] sm:$0x1] %vm14_vm1, %v13_v4  }
  0x80   :  { %v19_v5 = vpop.permute.xlu0 %18  }
  0x81   :  { %21 = vst.msk [vmem:[#allocation0] sm:$0x1] %vm20_vm2, %v19_v5  }
  0x88   :  { %v26_v6 = vld [vmem:[#allocation0] sm:$0x1] }
  0x89   :  { %29 = vst [vmem:[%s51_s1] sm:$0x1] %v26_v6 }

// kernel: match_block_forward.1
= control target key start
LH: loop header
LB: loop body
LE: loop exit
PB: predicated region body
PF: predicated region fallthrough
CT: control target
= control target key end

     0   :  { %vm1625_vm0 = vmmov 0   ;;  %vm230_vm1 = vcmask 130112   ;;  %vm237_vm2 = vcmask 195712   ;;  %vm244_vm3 = vcmask 261312   ;;  %s1626_s16 = smov 17   ;;  %s1628_s17 = smov 15   ;;  %s2691_s0 = inlined_call_operand.vmem [shape: f32[2,40,256], index: 0, kind: input, shape index: {}]   ;;  %s2692_s1 = inlined_call_operand.vmem [shape: f32[2,40,256], index: 1, kind: input, shape index: {}]   ;;  %s2693_s2 = inlined_call_operand.vmem [shape: f32[40,4], index: 2, kind: input, shape index: {}]   ;;  %s2694_s3 = inlined_call_operand.vmem [shape: f32[4,40], index: 3, kind: input, shape index: {}]   ;;  %s2695_s4 = inlined_call_operand.vmem [shape: f32[18,256], index: 4, kind: input, shape index: {}]   ;;  %s2696_s6 = inlined_call_operand.vmem [shape: f32[2,40,256], index: 6, kind: output, shape index: {1}]   ;;  %s2697_s5 = inlined_call_operand.vmem [shape: f32[2,40,256], index: 5, kind: output, shape index: {0}]  }
   0x1   :  { %v1673_v0 = vld [vmem:[%s2691_s0 + $0x50] sm:$0xff]  ;;  %v1678_v1 = vld [vmem:[%s2691_s0 + $0x58] sm:$0xff]  ;;  %v1683_v2 = vld [vmem:[%s2691_s0] sm:$0xff]  ;;  %vm251_vm4 = vcmask 326912   ;;  %vm277_vm5 = vcmask 1041409   ;;  %vm338_vm6 = vcmask 1043459  }
   0x2   :  { %v83_v3 = vadd.f32 %v1678_v1, %v1673_v0  ;;  %v1690_v4 = vld [vmem:[%s2691_s0 + $0x8] sm:$0xff]  ;;  %v1695_v5 = vld [vmem:[%s2691_s0 + $0x60] sm:$0xff]  ;;  %v1707_v8 = vld [vmem:[%s2691_s0 + $0x10] sm:$0xff]  ;;  %v124_v39 = vmax.f32 %v1673_v0, %v1678_v1  ;;  %vm463_vm7 = vcmask 1041408   ;;  %vm399_vm8 = vcmask 1045509   ;;  %s1629_s18 = smov 1  }
   0x3   :  { %v1700_v6 = vld [vmem:[%s2691_s0 + $0x68] sm:$0xff]  ;;  %v68_v7 = vadd.f32 %v1690_v4, %v1683_v2  ;;  %v1712_v9 = vld [vmem:[%s2691_s0 + $0x18] sm:$0xff]  ;;  %v1721_v12 = vld [vmem:[%s2691_s0 + $0x70] sm:$0xff]  ;;  %v109_v37 = vmax.f32 %v1683_v2, %v1690_v4  ;;  %vm465_vm9 = vcmask 1043456   ;;  %vm460_vm10 = vcmask 1047559   ;;  %s1630_s19 = smov 127  }
   0x4   :  { %84 = vadd.xlane.f32.xlu1 %v83_v3  ;;  %v86_v10 = vadd.f32 %v1700_v6, %v1695_v5  ;;  %v71_v11 = vadd.f32 %v1712_v9, %v1707_v8  ;;  %v1726_v13 = vld [vmem:[%s2691_s0 + $0x78] sm:$0xff]  ;;  %v1731_v14 = vld [vmem:[%s2691_s0 + $0x20] sm:$0xff]  ;;  %v1736_v15 = vld [vmem:[%s2691_s0 + $0x28] sm:$0xff]  ;;  %v112_v36 = vmax.f32 %v1707_v8, %v1712_v9  ;;  %v127_v38 = vmax.f32 %v1695_v5, %v1700_v6  ;;  %s1631_s20 = smov 113   ;;  %s1632_s21 = smov 112  }
   0x5   :  { %69 = vadd.xlane.f32.xlu0 %v68_v7  ;;  %v89_v16 = vadd.f32 %v1726_v13, %v1721_v12  ;;  %v74_v17 = vadd.f32 %v1736_v15, %v1731_v14  ;;  %v1745_v18 = vld [vmem:[%s2692_s1 + $0x10] sm:$0xff]  ;;  %v1750_v19 = vld [vmem:[%s2692_s1 + $0x18] sm:$0xff]  ;;  %v1755_v20 = vld [vmem:[%s2692_s1] sm:$0xff]  ;;  %v130_v52 = vmax.f32 %v1721_v12, %v1726_v13  ;;  %v115_v53 = vmax.f32 %v1731_v14, %v1736_v15  ;;  %s1633_s22 = smov 111  }
   0x6   :  { %v1760_v21 = vld [vmem:[%s2692_s1 + $0x8] sm:$0xff]  ;;  %v142_v22 = vadd.f32 %v1750_v19, %v1745_v18  ;;  %v1769_v24 = vld [vmem:[%s2692_s1 + $0x60] sm:$0xff]  ;;  %v1779_v26 = vld [vmem:[%s2692_s1 + $0x50] sm:$0xff]  ;;  %vm467_vm11 = vcmask 1045504   ;;  %vm469_vm12 = vcmask 326656   ;;  %vm544_vm13 = vcmask 31744  }
   0x7   :  { %v139_v23 = vadd.f32 %v1760_v21, %v1755_v20  ;;  %v1774_v25 = vld [vmem:[%s2692_s1 + $0x68] sm:$0xff]  ;;  %v1784_v27 = vld [vmem:[%s2692_s1 + $0x58] sm:$0xff]  ;;  %v1793_v30 = vld [vmem:[%s2691_s0 + $0x80] sm:$0xff] }
   0x8   :  { %87 = vadd.xlane.f32.xlu1 %v86_v10  ;;  %v157_v28 = vadd.f32 %v1774_v25, %v1769_v24  ;;  %v154_v29 = vadd.f32 %v1784_v27, %v1779_v26  ;;  %2738 = vst [vmem:[#allocation2_spill] sm:$0xff] %v1793_v30  ;;  %v1798_v31 = vld [vmem:[%s2691_s0 + $0x88] sm:$0xff]  ;;  %v1803_v32 = vld [vmem:[%s2691_s0 + $0x30] sm:$0xff]  ;;  %v1808_v33 = vld [vmem:[%s2691_s0 + $0x38] sm:$0xff] }
   0x9   :  { %72 = vadd.xlane.f32.xlu0 %v71_v11  ;;  %2739 = vst [vmem:[#allocation3_spill] sm:$0xff] %v1798_v31  ;;  %2740 = vst [vmem:[#allocation4_spill] sm:$0xff] %v1803_v32  ;;  %v92_v34 = vadd.f32 %v1798_v31, %v1793_v30  ;;  %v77_v35 = vadd.f32 %v1808_v33, %v1803_v32  ;;  %v1825_v40 = vld [vmem:[%s2692_s1 + $0x70] sm:$0xff]  ;;  %v1830_v41 = vld [vmem:[%s2692_s1 + $0x78] sm:$0xff]  ;;  %v133_v60 = vmax.f32 %v1793_v30, %v1798_v31 }
   0xa   :  { %2741 = vst [vmem:[#allocation5_spill] sm:$0xff] %v1808_v33  ;;  %v1835_v42 = vld [vmem:[%s2692_s1 + $0x20] sm:$0xff]  ;;  %v1840_v43 = vld [vmem:[%s2692_s1 + $0x28] sm:$0xff]  ;;  %v160_v44 = vadd.f32 %v1830_v41, %v1825_v40  ;;  %v1849_v46 = vld [vmem:[%s2691_s0 + $0x90] sm:$0xff]  ;;  %v118_v61 = vmax.f32 %v1803_v32, %v1808_v33 }
   0xb   :  { %2742 = vst [vmem:[#allocation6_spill] sm:$0xff] %v1835_v42  ;;  %2743 = vst [vmem:[#allocation7_spill] sm:$0xff] %v1840_v43  ;;  %v145_v45 = vadd.f32 %v1840_v43, %v1835_v42  ;;  %v1854_v47 = vld [vmem:[%s2691_s0 + $0x98] sm:$0xff]  ;;  %v1859_v48 = vld [vmem:[%s2691_s0 + $0x40] sm:$0xff] }
   0xc   :  { %90 = vadd.xlane.f32.xlu1 %v89_v16  ;;  %2744 = vst [vmem:[#allocation8_spill] sm:$0xff] %v1849_v46  ;;  %2745 = vst [vmem:[#allocation9_spill] sm:$0xff] %v1854_v47  ;;  %v1864_v49 = vld [vmem:[%s2691_s0 + $0x48] sm:$0xff]  ;;  %v95_v50 = vadd.f32 %v1854_v47, %v1849_v46  ;;  %v1877_v54 = vld [vmem:[%s2692_s1 + $0x80] sm:$0xff]  ;;  %v182_v16 = vmax.f32 %v1745_v18, %v1750_v19 }
   0xd   :  { %75 = vadd.xlane.f32.xlu0 %v74_v17  ;;  %2746 = vst [vmem:[#allocation10_spill] sm:$0xff] %v1859_v48  ;;  %2747 = vst [vmem:[#allocation11_spill] sm:$0xff] %v1864_v49  ;;  %v80_v51 = vadd.f32 %v1864_v49, %v1859_v48  ;;  %v1882_v55 = vld [vmem:[%s2692_s1 + $0x88] sm:$0xff]  ;;  %v1887_v56 = vld [vmem:[%s2692_s1 + $0x30] sm:$0xff]  ;;  %v179_v17 = vmax.f32 %v1755_v20, %v1760_v21 }
   0xe   :  { %2748 = vst [vmem:[#allocation12_spill] sm:$0xff] %v1877_v54  ;;  %2749 = vst [vmem:[#allocation13_spill] sm:$0xff] %v1882_v55  ;;  %v1892_v57 = vld [vmem:[%s2692_s1 + $0x38] sm:$0xff]  ;;  %v163_v58 = vadd.f32 %v1882_v55, %v1877_v54  ;;  %v1905_v62 = vld [vmem:[%s2692_s1 + $0x90] sm:$0xff] }
   0xf   :  { %2750 = vst [vmem:[#allocation14_spill] sm:$0xff] %v1887_v56  ;;  %2751 = vst [vmem:[#allocation15_spill] sm:$0xff] %v1892_v57  ;;  %v148_v59 = vadd.f32 %v1892_v57, %v1887_v56  ;;  %v1910_v63 = vld [vmem:[%s2692_s1 + $0x98] sm:$0xff]  ;;  %v1915_v3 = vld [vmem:[%s2692_s1 + $0x40] sm:$0xff] }
  0x10   :  { %143 = vadd.xlane.f32.xlu1 %v142_v22  ;;  %2752 = vst [vmem:[#allocation16_spill] sm:$0xff] %v1905_v62  ;;  %2753 = vst [vmem:[#allocation17_spill] sm:$0xff] %v1910_v63  ;;  %v1920_v7 = vld [vmem:[%s2692_s1 + $0x48] sm:$0xff]  ;;  %v166_v10 = vadd.f32 %v1910_v63, %v1905_v62  ;;  %v197_v22 = vmax.f32 %v1769_v24, %v1774_v25 }
  0x11   :  { %140 = vadd.xlane.f32.xlu0 %v139_v23  ;;  %2754 = vst [vmem:[#allocation18_spill] sm:$0xff] %v1915_v3  ;;  %2755 = vst [vmem:[#allocation19_spill] sm:$0xff] %v1920_v7  ;;  %v151_v11 = vadd.f32 %v1920_v7, %v1915_v3  ;;  %v194_v23 = vmax.f32 %v1779_v26, %v1784_v27 }
  0x14   :  { %158 = vadd.xlane.f32.xlu1 %v157_v28  ;;  %v136_v28 = vmax.f32 %v1849_v46, %v1854_v47 }
  0x15   :  { %155 = vadd.xlane.f32.xlu0 %v154_v29  ;;  %v121_v29 = vmax.f32 %v1859_v48, %v1864_v49 }
  0x18   :  { %93 = vadd.xlane.f32.xlu1 %v92_v34  ;;  %v200_v34 = vmax.f32 %v1825_v40, %v1830_v41 }
  0x19   :  { %78 = vadd.xlane.f32.xlu0 %v77_v35  ;;  %v185_v35 = vmax.f32 %v1835_v42, %v1840_v43 }
  0x1c   :  { %113 = vmax.xlane.f32.xlu1 %v112_v36  ;;  %v203_v36 = vmax.f32 %v1877_v54, %v1882_v55 }
  0x1d   :  { %110 = vmax.xlane.f32.xlu0 %v109_v37  ;;  %v188_v37 = vmax.f32 %v1887_v56, %v1892_v57 }
  0x20   :  { %128 = vmax.xlane.f32.xlu1 %v127_v38  ;;  %v206_v38 = vmax.f32 %v1905_v62, %v1910_v63 }
  0x21   :  { %125 = vmax.xlane.f32.xlu0 %v124_v39  ;;  %v191_v39 = vmax.f32 %v1915_v3, %v1920_v7 }
  0x24   :  { %161 = vadd.xlane.f32.xlu1 %v160_v44  ;;  %v1624_v44 = vmov 0.0  }
  0x25   :  { %146 = vadd.xlane.f32.xlu0 %v145_v45  ;;  %1555 = vmatprep.subr.mxu0 %v1624_v44  ;;  %v66_v45 = vld [vmem:[%s2693_s2 + $0x20] sm:$0xff] }
  0x26   :  { %1568 = vmatprep.subr.mxu1 %v1624_v44  ;;  %1556 = vmatpush3.msra.mxu0 %v66_v45 }
  0x27   :  { %1557 = vmatprep.subr.mxu0 %v1624_v44  ;;  %1565 = vmatprep.mubr.msk.f32.mxu0 %vm1625_vm0, %v1624_v44 }
  0x28   :  { %96 = vadd.xlane.f32.xlu1 %v95_v50  ;;  %v65_v50 = vld [vmem:[%s2693_s2 + $0x18] sm:$0xff]  ;;  %1570 = vmatprep.mubr.msk.f32.mxu1 %vm1625_vm0, %v1624_v44 }
  0x29   :  { %81 = vadd.xlane.f32.xlu0 %v80_v51  ;;  %1558 = vmatpush3.msra.mxu0 %v65_v50  ;;  %v64_v51 = vld [vmem:[%s2693_s2 + $0x10] sm:$0xff] }
  0x2a   :  { %1559 = vmatprep.subr.mxu0 %v1624_v44 }
  0x2b   :  { %1560 = vmatpush3.msra.mxu0 %v64_v51 }
  0x2c   :  { %131 = vmax.xlane.f32.xlu1 %v130_v52  ;;  %1561 = vmatprep.subr.mxu0 %v1624_v44  ;;  %v63_v52 = vld [vmem:[%s2693_s2 + $0x8] sm:$0xff] }
  0x2d   :  { %116 = vmax.xlane.f32.xlu0 %v115_v53  ;;  %1562 = vmatpush3.msra.mxu0 %v63_v52  ;;  %v62_v53 = vld [vmem:[%s2693_s2] sm:$0xff] }
  0x2e   :  { %1563 = vmatprep.subr.mxu0 %v1624_v44 }
  0x2f   :  { %1564 = vmatpush3.msra.mxu0 %v62_v53 }
  0x30   :  { %164 = vadd.xlane.f32.xlu1 %v163_v58  ;;  %v219_v58 = vlaneseq }
  0x31   :  { %149 = vadd.xlane.f32.xlu0 %v148_v59 }
  0x32   :  { %v1965_v59 = vand.u32 127, %v219_v58 }
  0x34   :  { %134 = vmax.xlane.f32.xlu1 %v133_v60  ;;  %2756 = vst [vmem:[#allocation20_spill] sm:$0xff] %v1965_v59  ;;  %v1967_v60 = vshrl.u32 %v219_v58, 7 }
  0x35   :  { %119 = vmax.xlane.f32.xlu0 %v118_v61  ;;  %v225_v61 = vadd.s32 4294967288, %v1965_v59 }
  0x36   :  { %2757 = vst [vmem:[#allocation21_spill] sm:$0xff] %v1967_v60 }
  0x38   :  { %167 = vadd.xlane.f32.xlu1 %v166_v10 }
  0x39   :  { %152 = vadd.xlane.f32.xlu0 %v151_v11 }
  0x3c   :  { %183 = vmax.xlane.f32.xlu1 %v182_v16  ;;  %v1972_v16 = vsub.s32 %v1965_v59, %v1967_v60 }
  0x3d   :  { %180 = vmax.xlane.f32.xlu0 %v179_v17 }
  0x40   :  { %198 = vmax.xlane.f32.xlu1 %v197_v22  ;;  %v1975_v22 = vsub.s32 %v225_v61, %v1967_v60 }
  0x41   :  { %195 = vmax.xlane.f32.xlu0 %v194_v23 }
  0x44   :  { %137 = vmax.xlane.f32.xlu1 %v136_v28 }
  0x45   :  { %122 = vmax.xlane.f32.xlu0 %v121_v29 }
  0x48   :  { %201 = vmax.xlane.f32.xlu1 %v200_v34 }
  0x49   :  { %186 = vmax.xlane.f32.xlu0 %v185_v35 }
  0x4c   :  { %204 = vmax.xlane.f32.xlu1 %v203_v36 }
  0x4d   :  { %189 = vmax.xlane.f32.xlu0 %v188_v37 }
  0x50   :  { %207 = vmax.xlane.f32.xlu1 %v206_v38 }
  0x51   :  { %192 = vmax.xlane.f32.xlu0 %v191_v39 }
  0x8d   :  { %v85_v10 = vpop.xlane.xlu1 %84 }
  0x8e   :  { %v70_v11 = vpop.xlane.xlu0 %69  ;;  %v104_v17 = vmul.f32 0.00390625, %v85_v10 }
  0x8f   :  { %v99_v23 = vmul.f32 0.00390625, %v70_v11 }
  0x90   :  { %v256_v36 = vrot.slane %v104_v17, %v1972_v16 }
  0x91   :  { %v88_v28 = vpop.xlane.xlu1 %87  ;;  %v224_v38 = vrot.slane %v99_v23, %v1972_v16  ;;  %v232_v23 = vadd.s32 4294967280, %v1965_v59 }
  0x92   :  { %v105_v29 = vmul.f32 0.00390625, %v88_v28  ;;  %v73_v34 = vpop.xlane.xlu0 %72 }
  0x93   :  { %v100_v35 = vmul.f32 0.00390625, %v73_v34 }
  0x94   :  { %v260_v37 = vrot.slane %v105_v29, %v1975_v22  ;;  %v239_v29 = vadd.s32 4294967272, %v1965_v59 }
  0x95   :  { %v229_v39 = vrot.slane %v100_v35, %v1975_v22  ;;  %v91_v44 = vpop.xlane.xlu1 %90 }
  0x96   :  { %v261_v45 = vsel %vm230_vm1, %v260_v37, %v256_v36  ;;  %v76_v50 = vpop.xlane.xlu0 %75  ;;  %v1994_v36 = vsub.s32 %v232_v23, %v1967_v60  ;;  %v106_v37 = vmul.f32 0.00390625, %v91_v44  ;;  %v1998_v7 = vsub.s32 %v239_v29, %v1967_v60 }
  0x97   :  { %v231_v51 = vsel %vm230_vm1, %v229_v39, %v224_v38  ;;  %v246_v38 = vadd.s32 4294967264, %v1965_v59  ;;  %v101_v39 = vmul.f32 0.00390625, %v76_v50 }
  0x98   :  { %v265_v48 = vrot.slane %v106_v37, %v1994_v36 }
  0x99   :  { %v144_v52 = vpop.xlane.xlu1 %143  ;;  %v2002_v47 = vsub.s32 %v246_v38, %v1967_v60  ;;  %v236_v23 = vrot.slane %v101_v39, %v1994_v36 }
  0x9a   :  { %v141_v53 = vpop.xlane.xlu0 %140  ;;  %v170_v55 = vmul.f32 0.00390625, %v144_v52 }
  0x9b   :  { %v238_v38 = vsel %vm237_vm2, %v236_v23, %v231_v51 }
  0x9d   :  { %v159_v58 = vpop.xlane.xlu1 %158 }
  0x9e   :  { %v156_v61 = vpop.xlane.xlu0 %155 }
  0xa1   :  { %v94_v10 = vpop.xlane.xlu1 %93 }
  0xa2   :  { %v79_v11 = vpop.xlane.xlu0 %78  ;;  %v107_v3 = vmul.f32 0.00390625, %v94_v10 }
  0xa3   :  { %v102_v62 = vmul.f32 0.00390625, %v79_v11  ;;  %v266_v11 = vsel %vm237_vm2, %v265_v48, %v261_v45 }
  0xa4   :  { %v270_v44 = vrot.slane %v107_v3, %v1998_v7 }
  0xa5   :  { %v1983_v28 = vpop.xlane.xlu1 %113  ;;  %v243_v50 = vrot.slane %v102_v62, %v1998_v7 }
  0xa6   :  { %v1985_v17 = vpop.xlane.xlu0 %110  ;;  %v271_v60 = vsel %vm244_vm3, %v270_v44, %v266_v11  ;;  %v297_v54 = vrot.slane %v1983_v28, %v1975_v22 }
  0xa7   :  { %v245_v57 = vsel %vm244_vm3, %v243_v50, %v238_v38  ;;  %v175_v50 = vmul.f32 0.00390625, %v159_v58  ;;  %v174_v38 = vmul.f32 0.00390625, %v156_v61  ;;  %v293_v52 = vrot.slane %v1985_v17, %v1972_v16 }
  0xa9   :  { %v1989_v34 = vpop.xlane.xlu1 %128 }
  0xaa   :  { %v1991_v35 = vpop.xlane.xlu0 %125  ;;  %v321_v58 = vrot.slane %v1989_v34, %v1975_v22 }
  0xad   :  { %v162_v63 = vpop.xlane.xlu1 %161 }
  0xae   :  { %v147_v49 = vpop.xlane.xlu0 %146  ;;  %v176_v61 = vmul.f32 0.00390625, %v162_v63 }
  0xaf   :  { %v171_v32 = vmul.f32 0.00390625, %v147_v49 }
  0xb1   :  { %v97_v46 = vpop.xlane.xlu1 %96 }
  0xb2   :  { %v108_v29 = vmul.f32 0.00390625, %v97_v46  ;;  %v82_v59 = vpop.xlane.xlu0 %81 }
  0xb3   :  { %v103_v10 = vmul.f32 0.00390625, %v82_v59 }
  0xb4   :  { %v275_v37 = vrot.slane %v108_v29, %v2002_v47 }
  0xb5   :  { %v250_v39 = vrot.slane %v103_v10, %v2002_v47  ;;  %v132_v3 = vpop.xlane.xlu1 %131 }
  0xb6   :  { %v276_v62 = vsel %vm251_vm4, %v275_v37, %v271_v60  ;;  %v117_v46 = vpop.xlane.xlu0 %116 }
  0xb7   :  { %v252_v56 = vsel %vm251_vm4, %v250_v39, %v245_v57  ;;  %v169_v57 = vmul.f32 0.00390625, %v141_v53  ;;  %v382_v39 = vrot.slane %v175_v50, %v1975_v22  ;;  %v317_v53 = vrot.slane %v1991_v35, %v1972_v16 }
  0xb8   :  { %v2016_v59 = vsel %vm277_vm5, %v276_v62, %v252_v56  ;;  %v358_v56 = vrot.slane %v170_v55, %v1975_v22  ;;  %v378_v62 = vrot.slane %v174_v38, %v1972_v16  ;;  %v326_v50 = vrot.slane %v132_v3, %v1994_v36 }
  0xb9   :  { %v165_v48 = vpop.xlane.xlu1 %164  ;;  %v302_v38 = vrot.slane %v117_v46, %v1994_v36  ;;  %v354_v34 = vrot.slane %v169_v57, %v1972_v16  ;;  %v298_v3 = vsel %vm230_vm1, %v297_v54, %v293_v52  ;;  %v322_v46 = vsel %vm230_vm1, %v321_v58, %v317_v53 }
  0xba   :  { %v150_v45 = vpop.xlane.xlu0 %149  ;;  %v177_v31 = vmul.f32 0.00390625, %v165_v48  ;;  %v383_v42 = vsel %vm230_vm1, %v382_v39, %v378_v62  ;;  %v387_v48 = vrot.slane %v176_v61, %v1994_v36 }
  0xbb   :  { %v172_v28 = vmul.f32 0.00390625, %v150_v45  ;;  %v303_v57 = vsel %vm237_vm2, %v302_v38, %v298_v3 }
  0xbd   :  { %v135_v29 = vpop.xlane.xlu1 %134  ;;  %v368_v39 = vrot.slane %v172_v28, %v1998_v7 }
  0xbe   :  { %v120_v51 = vpop.xlane.xlu0 %119  ;;  %v331_v30 = vrot.slane %v135_v29, %v1998_v7 }
  0xbf   :  { %v307_v43 = vrot.slane %v120_v51, %v1998_v7  ;;  %v363_v51 = vrot.slane %v171_v32, %v1994_v36 }
  0xc1   :  { %v168_v23 = vpop.xlane.xlu1 %167  ;;  %v308_v62 = vsel %vm244_vm3, %v307_v43, %v303_v57 }
  0xc2   :  { %v153_v44 = vpop.xlane.xlu0 %152  ;;  %v178_v17 = vmul.f32 0.00390625, %v168_v23  ;;  %v327_v23 = vsel %vm237_vm2, %v326_v50, %v322_v46 }
  0xc3   :  { %v173_v45 = vmul.f32 0.00390625, %v153_v44  ;;  %v332_v54 = vsel %vm244_vm3, %v331_v30, %v327_v23 }
  0xc4   :  { %v397_v52 = vrot.slane %v178_v17, %v2002_v47 }
  0xc5   :  { %v2018_v11 = vpop.xlane.xlu1 %183  ;;  %v373_v61 = vrot.slane %v173_v45, %v2002_v47 }
  0xc6   :  { %v2020_v10 = vpop.xlane.xlu0 %180  ;;  %v419_v30 = vrot.slane %v2018_v11, %v1975_v22 }
  0xc7   :  { %v415_v43 = vrot.slane %v2020_v10, %v1972_v16 }
  0xc9   :  { %v2022_v60 = vpop.xlane.xlu1 %198 }
  0xca   :  { %v2024_v37 = vpop.xlane.xlu0 %195  ;;  %v443_v44 = vrot.slane %v2022_v60, %v1975_v22  ;;  %v359_v60 = vsel %vm230_vm1, %v358_v56, %v354_v34 }
  0xcb   :  { %v439_v32 = vrot.slane %v2024_v37, %v1972_v16  ;;  %v388_v37 = vsel %vm237_vm2, %v387_v48, %v383_v42  ;;  %v364_v17 = vsel %vm237_vm2, %v363_v51, %v359_v60 }
  0xcc   :  { %v369_v16 = vsel %vm244_vm3, %v368_v39, %v364_v17 }
  0xcd   :  { %v138_v33 = vpop.xlane.xlu1 %137  ;;  %v444_v56 = vsel %vm230_vm1, %v443_v44, %v439_v32  ;;  %v374_v42 = vsel %vm251_vm4, %v373_v61, %v369_v16  ;;  %v691_v44 = vadd.f32 %v1769_v24, %v1779_v26  ;;  %v671_v32 = vadd.f32 %v1745_v18, %v1755_v20  ;;  %v2761_v16 = vld [vmem:[#allocation3_spill] sm:$0xff] }
  0xce   :  { %v123_v55 = vpop.xlane.xlu0 %122  ;;  %v336_v63 = vrot.slane %v138_v33, %v2002_v47  ;;  %v392_v33 = vrot.slane %v177_v31, %v1998_v7 }
  0xcf   :  { %v312_v49 = vrot.slane %v123_v55, %v2002_v47 }
  0xd0   :  { %v337_v58 = vsel %vm251_vm4, %v336_v63, %v332_v54  ;;  %v393_v63 = vsel %vm244_vm3, %v392_v33, %v388_v37  ;;  %v2758_v37 = vld [vmem:[#allocation6_spill] sm:$0xff] }
  0xd1   :  { %v202_v35 = vpop.xlane.xlu1 %201  ;;  %v313_v53 = vsel %vm251_vm4, %v312_v49, %v308_v62  ;;  %v398_v10 = vsel %vm251_vm4, %v397_v52, %v393_v63  ;;  %v626_v62 = vadd.f32 %v1707_v8, %v1683_v2  ;;  %v636_v52 = vadd.f32 %v1712_v9, %v1690_v4 }
  0xd2   :  { %v187_v29 = vpop.xlane.xlu0 %186  ;;  %v448_v55 = vrot.slane %v202_v35, %v1994_v36  ;;  %v339_v22 = vsel %vm338_vm6, %v337_v58, %v313_v53  ;;  %v400_v57 = vsel %vm399_vm8, %v398_v10, %v374_v42  ;;  %v681_v58 = vadd.f32 %v1750_v19, %v1760_v21 }
  0xd3   :  { %v424_v38 = vrot.slane %v187_v29, %v1994_v36  ;;  %v420_v36 = vsel %vm230_vm1, %v419_v30, %v415_v43  ;;  %v464_v45 = vsel %vm463_vm7, %v2016_v59, %v339_v22  ;;  %v656_v59 = vadd.f32 %v1700_v6, %v1678_v1  ;;  %v2760_v22 = vld [vmem:[#allocation2_spill] sm:$0xff] }
  0xd4   :  { %v449_v49 = vsel %vm237_vm2, %v448_v55, %v444_v56  ;;  %v466_v39 = vsel %vm465_vm9, %v464_v45, %v400_v57  ;;  %v701_v53 = vadd.f32 %v1774_v25, %v1784_v27  ;;  %v627_v30 = vadd.f32 %v626_v62, %v1731_v14  ;;  %v2767_v45 = vld [vmem:[#allocation15_spill] sm:$0xff]  ;;  %v2773_v62 = vld [vmem:[#allocation17_spill] sm:$0xff] }
  0xd5   :  { %v205_v31 = vpop.xlane.xlu1 %204  ;;  %v425_v46 = vsel %vm237_vm2, %v424_v38, %v420_v36  ;;  %v657_v61 = vadd.f32 %v656_v59, %v1726_v13  ;;  %v637_v43 = vadd.f32 %v636_v52, %v1736_v15  ;;  %v692_v55 = vadd.f32 %v691_v44, %v1825_v40  ;;  %v2763_v36 = vld [vmem:[#allocation5_spill] sm:$0xff]  ;;  %v2775_v44 = vld [vmem:[#allocation19_spill] sm:$0xff] }
  0xd6   :  { %v190_v50 = vpop.xlane.xlu0 %189  ;;  %v453_v28 = vrot.slane %v205_v31, %v1998_v7  ;;  %v702_v60 = vadd.f32 %v701_v53, %v1830_v41  ;;  %v672_v38 = vadd.f32 %v671_v32, %v2758_v37  ;;  %v733_v63 = vmax.f32 %v1683_v2, %v1707_v8  ;;  %v2765_v8 = vld [vmem:[#allocation13_spill] sm:$0xff] }
  0xd7   :  { %v429_v11 = vrot.slane %v190_v50, %v1998_v7  ;;  %v753_v50 = vmax.f32 %v1673_v0, %v1695_v5  ;;  %v658_v10 = vadd.f32 %v657_v61, %v2761_v16  ;;  %v773_v56 = vmax.f32 %v1755_v20, %v1745_v18 }
  0xd8   :  { %v454_v7 = vsel %vm244_vm3, %v453_v28, %v449_v49  ;;  %v2759_v28 = vld [vmem:[#allocation7_spill] sm:$0xff]  ;;  %v638_v49 = vadd.f32 %v637_v43, %v2763_v36  ;;  %v743_v20 = vmax.f32 %v1690_v4, %v1712_v9 }
  0xd9   :  { %v208_v34 = vpop.xlane.xlu1 %207  ;;  %v430_v29 = vsel %vm244_vm3, %v429_v11, %v425_v46  ;;  %v682_v17 = vadd.f32 %v681_v58, %v2759_v28  ;;  %v754_v2 = vmax.f32 %v753_v50, %v1721_v12  ;;  %v703_v46 = vadd.f32 %v702_v60, %v2765_v8  ;;  %v2771_v9 = vld [vmem:[#allocation11_spill] sm:$0xff] }
  0xda   :  { %v458_v35 = vrot.slane %v208_v34, %v2002_v47  ;;  %v193_v3 = vpop.xlane.xlu0 %192  ;;  %v793_v34 = vmax.f32 %v1779_v26, %v1769_v24  ;;  %v734_v24 = vmax.f32 %v733_v63, %v1731_v14  ;;  %v2769_v26 = vld [vmem:[#allocation9_spill] sm:$0xff]  ;;  %v774_v57 = vmax.f32 %v773_v56, %v2758_v37 }
  0xdb   :  { %v434_v48 = vrot.slane %v193_v3, %v2002_v47  ;;  %v646_v47 = vadd.f32 %v1695_v5, %v1673_v0  ;;  %v763_v0 = vmax.f32 %v1678_v1, %v1700_v6  ;;  %v2762_v5 = vld [vmem:[#allocation4_spill] sm:$0xff]  ;;  %v683_v18 = vadd.f32 %v682_v17, %v2767_v45 }
  0xdc   :  { %v459_v51 = vsel %vm251_vm4, %v458_v35, %v454_v7  ;;  %v628_v42 = vadd.f32 %v627_v30, %v2762_v5  ;;  %v2764_v35 = vld [vmem:[#allocation12_spill] sm:$0xff]  ;;  %v2766_v7 = vld [vmem:[#allocation14_spill] sm:$0xff]  ;;  %v639_v14 = vadd.f32 %v638_v49, %v2771_v9  ;;  %v755_v59 = vmax.f32 %v754_v2, %v2760_v22 }
  0xdd   :  { %v435_v23 = vsel %vm251_vm4, %v434_v48, %v430_v29  ;;  %v647_v31 = vadd.f32 %v646_v47, %v1721_v12  ;;  %v693_v3 = vadd.f32 %v692_v55, %v2764_v35  ;;  %v673_v48 = vadd.f32 %v672_v38, %v2766_v7  ;;  %v2768_v1 = vld [vmem:[#allocation8_spill] sm:$0xff] }
  0xde   :  { %v461_v33 = vsel %vm460_vm10, %v459_v51, %v435_v23  ;;  %v659_v29 = vadd.f32 %v658_v10, %v2769_v26  ;;  %v783_v51 = vmax.f32 %v1760_v21, %v1750_v19  ;;  %v803_v12 = vmax.f32 %v1784_v27, %v1774_v25  ;;  %v2774_v19 = vld [vmem:[#allocation18_spill] sm:$0xff] }
  0xdf   :  { %v468_v54 = vsel %vm467_vm11, %v466_v39, %v461_v33  ;;  %v648_v11 = vadd.f32 %v647_v31, %v2760_v22  ;;  %v794_v23 = vmax.f32 %v793_v34, %v1825_v40  ;;  %v764_v33 = vmax.f32 %v763_v0, %v1726_v13  ;;  %v2770_v39 = vld [vmem:[#allocation10_spill] sm:$0xff] }
  0xe0   :  { %1566 = vmatmul.mubr.msk.f32.vlgmr.msra.gmra.mxu0 %vm469_vm12, %v468_v54  ;;  %v629_v4 = vadd.f32 %v628_v42, %v2770_v39  ;;  %v2772_v54 = vld [vmem:[#allocation16_spill] sm:$0xff]  ;;  %v704_v52 = vadd.f32 %v703_v46, %v2773_v62  ;;  %v674_v21 = vadd.f32 %v673_v48, %v2774_v19  ;;  %v684_v25 = vadd.f32 %v683_v18, %v2775_v44 }
  0xe1   :  { %v649_v6 = vadd.f32 %v648_v11, %v2768_v1  ;;  %v694_v47 = vadd.f32 %v693_v3, %v2772_v54  ;;  %v744_v27 = vmax.f32 %v743_v20, %v1736_v15  ;;  %v735_v40 = vmax.f32 %v734_v24, %v2762_v5 }
  0xe2   :  { %v660_v13 = vrot.slane %v659_v29, 4  ;;  %v804_v58 = vmax.f32 %v803_v12, %v1830_v41  ;;  %v784_v53 = vmax.f32 %v783_v51, %v2759_v28  ;;  %v795_v31 = vmax.f32 %v794_v23, %v2764_v35 }
  0xe3   :  { %v650_v32 = vrot.slane %v649_v6, 4  ;;  %v775_v61 = vmax.f32 %v774_v57, %v2766_v7  ;;  %v765_v30 = vmax.f32 %v764_v33, %v2761_v16  ;;  %v630_v43 = vrot.slane %v629_v4, 4 }
  0xe4   :  { %v640_v55 = vrot.slane %v639_v14, 4  ;;  %v695_v50 = vrot.slane %v694_v47, 4  ;;  %v756_v60 = vmax.f32 %v755_v59, %v2768_v1  ;;  %v705_v15 = vrot.slane %v704_v52, 4 }
  0xe5   :  { %v675_v37 = vrot.slane %v674_v21, 4  ;;  %v685_v38 = vrot.slane %v684_v25, 4  ;;  %v745_v17 = vmax.f32 %v744_v27, %v2763_v36  ;;  %v651_v63 = vadd.f32 %v650_v32, %v649_v6 }
  0xe6   :  { %v661_v41 = vadd.f32 %v660_v13, %v659_v29  ;;  %v736_v28 = vmax.f32 %v735_v40, %v2770_v39  ;;  %v805_v22 = vmax.f32 %v804_v58, %v2765_v8  ;;  %v785_v11 = vmax.f32 %v784_v53, %v2767_v45 }
  0xe7   :  { %v796_v16 = vmax.f32 %v795_v31, %v2772_v54  ;;  %v776_v10 = vmax.f32 %v775_v61, %v2774_v19  ;;  %v766_v56 = vmax.f32 %v765_v30, %v2769_v26  ;;  %v631_v34 = vadd.f32 %v630_v43, %v629_v4 }
  0xe8   :  { %v641_v0 = vadd.f32 %v640_v55, %v639_v14  ;;  %v696_v5 = vadd.f32 %v695_v50, %v694_v47  ;;  %v757_v42 = vrot.slane %v756_v60, 4  ;;  %v706_v49 = vadd.f32 %v705_v15, %v704_v52 }
  0xe9   :  { %v676_v36 = vadd.f32 %v675_v37, %v674_v21  ;;  %v686_v35 = vadd.f32 %v685_v38, %v684_v25  ;;  %v652_v3 = vrot.slane %v651_v63, 2  ;;  %v662_v2 = vrot.slane %v661_v41, 2 }
  0xea   :  { %v737_v46 = vrot.slane %v736_v28, 4  ;;  %v746_v8 = vmax.f32 %v745_v17, %v2771_v9  ;;  %v797_v7 = vrot.slane %v796_v16, 4  ;;  %v806_v48 = vmax.f32 %v805_v22, %v2773_v62 }
  0xeb   :  { %v777_v45 = vrot.slane %v776_v10, 4  ;;  %v786_v18 = vmax.f32 %v785_v11, %v2775_v44  ;;  %v767_v20 = vrot.slane %v766_v56, 4  ;;  %v632_v24 = vrot.slane %v631_v34, 2 }
  0xec   :  { %v642_v1 = vrot.slane %v641_v0, 2  ;;  %v697_v6 = vrot.slane %v696_v5, 2  ;;  %v758_v26 = vmax.f32 %v756_v60, %v757_v42  ;;  %v707_v29 = vrot.slane %v706_v49, 2 }
  0xed   :  { %v677_v51 = vrot.slane %v676_v36, 2  ;;  %v687_v12 = vrot.slane %v686_v35, 2  ;;  %v653_v23 = vadd.f32 %v652_v3, %v651_v63  ;;  %v663_v57 = vadd.f32 %v662_v2, %v661_v41 }
  0xee   :  { %v738_v33 = vmax.f32 %v736_v28, %v737_v46  ;;  %v747_v39 = vrot.slane %v746_v8, 4  ;;  %v798_v4 = vmax.f32 %v796_v16, %v797_v7  ;;  %v807_v9 = vrot.slane %v806_v48, 4 }
  0xef   :  { %v778_v14 = vmax.f32 %v776_v10, %v777_v45  ;;  %v787_v54 = vrot.slane %v786_v18, 4  ;;  %v768_v47 = vmax.f32 %v766_v56, %v767_v20  ;;  %v633_v59 = vadd.f32 %v632_v24, %v631_v34 }
  0xf0   :  { %v643_v62 = vadd.f32 %v642_v1, %v641_v0  ;;  %v698_v52 = vadd.f32 %v697_v6, %v696_v5  ;;  %v759_v19 = vrot.slane %v758_v26, 2  ;;  %v708_v21 = vadd.f32 %v707_v29, %v706_v49 }
  0xf1   :  { %v678_v44 = vadd.f32 %v677_v51, %v676_v36  ;;  %v688_v25 = vadd.f32 %v687_v12, %v686_v35  ;;  %v654_v27 = vrot.slane %v653_v23, 1  ;;  %v664_v40 = vrot.slane %v663_v57, 1 }
  0xf2   :  { %v739_v32 = vrot.slane %v738_v33, 2  ;;  %v748_v13 = vmax.f32 %v746_v8, %v747_v39  ;;  %v799_v58 = vrot.slane %v798_v4, 2  ;;  %v808_v53 = vmax.f32 %v806_v48, %v807_v9 }
  0xf3   :  { %v779_v31 = vrot.slane %v778_v14, 2  ;;  %v788_v61 = vmax.f32 %v786_v18, %v787_v54  ;;  %v769_v30 = vrot.slane %v768_v47, 2  ;;  %v634_v43 = vrot.slane %v633_v59, 1 }
  0xf4   :  { %v644_v55 = vrot.slane %v643_v62, 1  ;;  %v699_v50 = vrot.slane %v698_v52, 1  ;;  %v760_v60 = vmax.f32 %v758_v26, %v759_v19  ;;  %v709_v15 = vrot.slane %v708_v21, 1  ;;  %v67_v19 = vld [vmem:[%s2694_s3] sm:$0xf]  ;;  %s1627_s3 = smov 16  }
  0xf5   :  { %v679_v37 = vrot.slane %v678_v44, 1  ;;  %v689_v38 = vrot.slane %v688_v25, 1  ;;  %v655_v17 = vadd.f32 %v654_v27, %v653_v23  ;;  %v665_v63 = vadd.f32 %v664_v40, %v663_v57  ;;  %1569 = vmatpush3.msk.msra.mxu1 %vm465_vm9, %v67_v19 }
  0xf6   :  { %v740_v41 = vmax.f32 %v738_v33, %v739_v32  ;;  %v749_v28 = vrot.slane %v748_v13, 2  ;;  %v800_v22 = vmax.f32 %v798_v4, %v799_v58  ;;  %v809_v11 = vrot.slane %v808_v53, 2 }
  0xf7   :  { %v780_v16 = vmax.f32 %v778_v14, %v779_v31  ;;  %v789_v10 = vrot.slane %v788_v61, 2  ;;  %v770_v56 = vmax.f32 %v768_v47, %v769_v30  ;;  %v635_v34 = vadd.f32 %v634_v43, %v633_v59 }
  0xf8   :  { %v645_v0 = vadd.f32 %v644_v55, %v643_v62  ;;  %v700_v5 = vadd.f32 %v699_v50, %v698_v52  ;;  %v761_v42 = vrot.slane %v760_v60, 1  ;;  %v710_v49 = vadd.f32 %v709_v15, %v708_v21 }
  0xf9   :  { %v680_v36 = vadd.f32 %v679_v37, %v678_v44  ;;  %v690_v35 = vadd.f32 %v689_v38, %v688_v25  ;;  %v669_v3 = vmul.f32 0.025, %v655_v17  ;;  %v670_v2 = vmul.f32 0.025, %v665_v63  ;;  %v2776_v38 = vld [vmem:[#allocation21_spill] sm:$0xff] }
  0xfa   :  { %v741_v46 = vrot.slane %v740_v41, 1  ;;  %v750_v8 = vmax.f32 %v748_v13, %v749_v28  ;;  %v801_v7 = vrot.slane %v800_v22, 1  ;;  %v810_v48 = vmax.f32 %v808_v53, %v809_v11 }
  0xfb   :  { %v781_v45 = vrot.slane %v780_v16, 1  ;;  %v790_v18 = vmax.f32 %v788_v61, %v789_v10  ;;  %v667_v20 = vmul.f32 0.025, %v635_v34  ;;  %v668_v24 = vmul.f32 0.025, %v645_v0 }
  0xfc   :  { %v713_v1 = vmul.f32 0.025, %v700_v5  ;;  %v714_v6 = vmul.f32 0.025, %v710_v49  ;;  %v711_v26 = vmul.f32 0.025, %v680_v36  ;;  %v762_v51 = vmax.f32 %v760_v60, %v761_v42 }
  0xfd   :  { %v712_v29 = vmul.f32 0.025, %v690_v35  ;;  %v771_v12 = vrot.slane %v770_v56, 1  ;;  %v742_v23 = vmax.f32 %v740_v41, %v741_v46  ;;  %v751_v57 = vrot.slane %v750_v8, 1 }
  0xfe   :  { %v802_v33 = vmax.f32 %v800_v22, %v801_v7  ;;  %v811_v39 = vrot.slane %v810_v48, 1  ;;  %v782_v4 = vmax.f32 %v780_v16, %v781_v45  ;;  %v791_v9 = vrot.slane %v790_v18, 1  ;;  %v1530_v49 = vld [vmem:[%s2695_s4 + $0x4] ss:$8 sm:$0x3] }
  0xff   :  { %v719_v14 = vsel %vm277_vm5, %v669_v3, %v667_v20  ;;  %v720_v54 = vsel %vm277_vm5, %v670_v2, %v668_v24  ;;  %v727_v47 = vsel %vm338_vm6, %v713_v1, %v711_v26  ;;  %v728_v59 = vsel %vm338_vm6, %v714_v6, %v712_v29  ;;  %v1531_v36 = vld [vmem:[%s2695_s4 + $0x15] ss:$8 sm:$0x3]  ;;  %v1532_v29 = vld [vmem:[%s2695_s4 + $0x11] ss:$8 sm:$0x3] }
 0x100   :  { %v772_v62 = vmax.f32 %v770_v56, %v771_v12  ;;  %v752_v52 = vmax.f32 %v750_v8, %v751_v57  ;;  %v812_v21 = vmax.f32 %v810_v48, %v811_v39  ;;  %v792_v44 = vmax.f32 %v790_v18, %v791_v9  ;;  %v2777_v8 = vld [vmem:[#allocation20_spill] sm:$0xff]  ;;  %v876_v18 = vld [vmem:[%s2695_s4] ss:$8 sm:$0x3] }
 0x101   :  { %v817_v25 = vsel %vm277_vm5, %v762_v51, %v742_v23  ;;  %v825_v27 = vsel %vm338_vm6, %v802_v33, %v782_v4  ;;  %v2185_v40 = vsel %vm463_vm7, %v720_v54, %v728_v59  ;;  %v2188_v32 = vsel %vm463_vm7, %v719_v14, %v727_v47 }
 0x102   :  { %865 = vrot.lane.b32.xlu1 %v2185_v40, %s1626_s16  ;;  %863 = vrot.lane.b32.xlu0 %v2188_v32, %s1626_s16  ;;  %v2193_v13 = vsel %vm463_vm7, %v817_v25, %v825_v27  ;;  %v818_v58 = vsel %vm277_vm5, %v772_v62, %v752_v52  ;;  %v826_v53 = vsel %vm338_vm6, %v812_v21, %v792_v44  ;;  %v2231_v17 = vsub.s32 0, %v2776_v38  ;;  %v1533_v21 = vld [vmem:[%s2695_s4 + $0x1] ss:$8 sm:$0x3] }
 0x103   :  { %v2200_v31 = vsel %vm463_vm7, %v818_v58, %v826_v53  ;;  %v2235_v16 = vsub.s32 1, %v2776_v38  ;;  %v1393_v42 = vsub.s32 4, %v2776_v38  ;;  %vm867_vm14 = vcmp.lt.s32.totalorder %v2777_v8, 17 }
 0x104   :  { %v837_v46 = vrot.slane %v1530_v49, %v2231_v17  ;;  %v852_v48 = vrot.slane %v1531_v36, %v2231_v17  ;;  %v1416_v20 = vsub.s32 5, %v2776_v38  ;;  %v881_v1 = vrot.slane %v876_v18, %v2231_v17 }
 0x105   :  { %v841_v7 = vrot.slane %v1530_v49, %v2235_v16  ;;  %v856_v45 = vrot.slane %v1531_v36, %v2235_v16  ;;  %v885_v6 = vrot.slane %v876_v18, %v2235_v16  ;;  %v898_v14 = vrot.slane %v1532_v29, %v2231_v17 }
 0x106   :  { %870 = vrot.lane.b32.xlu1 %v2193_v13, %s1626_s16  ;;  %909 = vrot.lane.b32.xlu0 %v2188_v32, %s1627_s3  ;;  %v844_v24 = vmul.f32 %v837_v46, %v2188_v32  ;;  %v859_v12 = vmul.f32 %v852_v48, %v2193_v13  ;;  %v902_v54 = vrot.slane %v1532_v29, %v2235_v16  ;;  %vm913_vm15 = vcmp.lt.s32.totalorder %v2777_v8, 16 }
 0x107   :  { %v845_v51 = vmul.f32 %v841_v7, %v2185_v40  ;;  %v860_v23 = vmul.f32 %v856_v45, %v2200_v31  ;;  %vm960_vm0 = vcmp.lt.s32.totalorder %v2777_v8, 15  ;;  %v1536_v7 = vld [vmem:[%s2695_s4 + $0x13] ss:$8 sm:$0x3]  ;;  %vm1007_vm1 = vcmp.lt.s32.totalorder %v2777_v8, 1 }
 0x108   :  { %v861_v62 = vadd.f32 %v859_v12, %v844_v24  ;;  %v992_v24 = vrot.slane %v1536_v7, %v2231_v17  ;;  %vm1054_vm2 = vcmp.lt.s32.totalorder %v2777_v8, 127  ;;  %vm1101_vm3 = vcmp.lt.s32.totalorder %v2777_v8, 113 }
 0x109   :  { %v862_v52 = vadd.f32 %v860_v23, %v845_v51  ;;  %vm1148_vm4 = vcmp.lt.s32.totalorder %v2777_v8, 112  ;;  %vm1195_vm5 = vcmp.lt.s32.totalorder %v2777_v8, 111 }
 0x10a   :  { %872 = vrot.lane.b32.xlu1 %v2200_v31, %s1626_s16  ;;  %916 = vrot.lane.b32.xlu0 %v2193_v13, %s1627_s3 }
 0x10e   :  { %911 = vrot.lane.b32.xlu1 %v2185_v40, %s1627_s3  ;;  %956 = vrot.lane.b32.xlu0 %v2188_v32, %s1628_s17 }
 0x112   :  { %918 = vrot.lane.b32.xlu1 %v2200_v31, %s1627_s3  ;;  %963 = vrot.lane.b32.xlu0 %v2193_v13, %s1628_s17 }
 0x116   :  { %958 = vrot.lane.b32.xlu1 %v2185_v40, %s1628_s17  ;;  %1003 = vrot.lane.b32.xlu0 %v2188_v32, %s1629_s18 }
 0x11a   :  { %965 = vrot.lane.b32.xlu1 %v2200_v31, %s1628_s17  ;;  %1010 = vrot.lane.b32.xlu0 %v2193_v13, %s1629_s18 }
 0x11e   :  { %1005 = vrot.lane.b32.xlu1 %v2185_v40, %s1629_s18  ;;  %1050 = vrot.lane.b32.xlu0 %v2188_v32, %s1630_s19 }
 0x122   :  { %1012 = vrot.lane.b32.xlu1 %v2200_v31, %s1629_s18  ;;  %1057 = vrot.lane.b32.xlu0 %v2193_v13, %s1630_s19 }
 0x126   :  { %1052 = vrot.lane.b32.xlu1 %v2185_v40, %s1630_s19  ;;  %1097 = vrot.lane.b32.xlu0 %v2188_v32, %s1631_s20 }
 0x12a   :  { %1059 = vrot.lane.b32.xlu1 %v2200_v31, %s1630_s19  ;;  %1104 = vrot.lane.b32.xlu0 %v2193_v13, %s1631_s20 }
 0x12e   :  { %1099 = vrot.lane.b32.xlu1 %v2185_v40, %s1631_s20  ;;  %1144 = vrot.lane.b32.xlu0 %v2188_v32, %s1632_s21 }
 0x132   :  { %1106 = vrot.lane.b32.xlu1 %v2200_v31, %s1631_s20  ;;  %1151 = vrot.lane.b32.xlu0 %v2193_v13, %s1632_s21 }
 0x136   :  { %1146 = vrot.lane.b32.xlu1 %v2185_v40, %s1632_s21  ;;  %1191 = vrot.lane.b32.xlu0 %v2188_v32, %s1633_s22  ;;  %v928_v32 = vrot.slane %v1533_v21, %v2231_v17 }
 0x13a   :  { %1153 = vrot.lane.b32.xlu1 %v2200_v31, %s1632_s21  ;;  %1198 = vrot.lane.b32.xlu0 %v2193_v13, %s1633_s22  ;;  %v932_v13 = vrot.slane %v1533_v21, %v2235_v16  ;;  %v1539_v21 = vld [vmem:[%s2695_s4 + $0x5] ss:$8 sm:$0x3] }
 0x13e   :  { %1193 = vrot.lane.b32.xlu1 %v2185_v40, %s1633_s22 }
 0x142   :  { %1200 = vrot.lane.b32.xlu1 %v2200_v31, %s1633_s22 }
 0x174   :  { %v866_v55 = vpop.permute.xlu1 %865  ;;  %v864_v11 = vpop.permute.xlu0 %863 }
 0x175   :  { %v869_v26 = vsel %vm867_vm14, %v866_v55, %v864_v11  ;;  %v868_v39 = vsel %vm867_vm14, %v864_v11, %v866_v55  ;;  %v1535_v11 = vld [vmem:[%s2695_s4 + $0x2] ss:$8 sm:$0x3] }
 0x176   :  { %v888_v59 = vmul.f32 %v881_v1, %v869_v26  ;;  %v889_v19 = vmul.f32 %v885_v6, %v868_v39  ;;  %v975_v49 = vrot.slane %v1535_v11, %v2231_v17  ;;  %v979_v36 = vrot.slane %v1535_v11, %v2235_v16  ;;  %v1541_v11 = vld [vmem:[%s2695_s4 + $0x6] ss:$8 sm:$0x3] }
 0x177   :  { %v996_v1 = vrot.slane %v1536_v7, %v2235_v16 }
 0x178   :  { %v871_v63 = vpop.permute.xlu1 %870  ;;  %v2240_v34 = vpop.permute.xlu0 %909  ;;  %v890_v58 = vadd.f32 %v888_v59, %v861_v62  ;;  %v891_v53 = vadd.f32 %v889_v19, %v862_v52 }
 0x17c   :  { %v873_v22 = vpop.permute.xlu1 %872  ;;  %v2244_v5 = vpop.permute.xlu0 %916 }
 0x17d   :  { %v874_v9 = vsel %vm867_vm14, %v871_v63, %v873_v22  ;;  %v875_v47 = vsel %vm867_vm14, %v873_v22, %v871_v63 }
 0x17e   :  { %v905_v27 = vmul.f32 %v898_v14, %v875_v47  ;;  %v906_v40 = vmul.f32 %v902_v54, %v874_v9 }
 0x180   :  { %v2238_v56 = vpop.permute.xlu1 %911  ;;  %v2255_v2 = vpop.permute.xlu0 %956  ;;  %v907_v55 = vadd.f32 %v905_v27, %v890_v58 }
 0x181   :  { %v915_v31 = vsel %vm913_vm15, %v2238_v56, %v2240_v34 }
 0x184   :  { %v2242_v0 = vpop.permute.xlu1 %918  ;;  %v964_v33 = vpop.permute.xlu0 %963 }
 0x185   :  { %v921_v22 = vsel %vm913_vm15, %v2242_v0, %v2244_v5 }
 0x188   :  { %v2253_v3 = vpop.permute.xlu1 %958  ;;  %v1004_v25 = vpop.permute.xlu0 %1003 }
 0x18c   :  { %v966_v57 = vpop.permute.xlu1 %965 }
 0x18d   :  { %v967_v6 = vsel %vm960_vm0, %v964_v33, %v966_v57 }
 0x18e   :  { %v1000_v39 = vmul.f32 %v996_v1, %v967_v6 }
 0x190   :  { %v1006_v44 = vpop.permute.xlu1 %1005 }
 0x191   :  { %v1009_v14 = vsel %vm1007_vm1, %v1006_v44, %v1004_v25 }
 0x1a0   :  { %v539_v61 = vpop.f32.mrf.mxu0 }
 0x1a1   :  { %v543_v30 = vmax.f32 %v539_v61, 0.0  ;;  %v914_v61 = vsel %vm913_vm15, %v2240_v34, %v2238_v56 }
 0x1a2   :  { %v1567_v43 = vpop.f32.mrf.mxu0 }
 0x1a3   :  { %1571 = vmatmul.mubr.msk.f32.vlgmr.msra.gmra.mxu1 %vm544_vm13, %v543_v30  ;;  %v1534_v30 = vld [vmem:[%s2695_s4 + $0x12] ss:$8 sm:$0x3]  ;;  %v935_v43 = vmul.f32 %v928_v32, %v915_v31 }
 0x1a4   :  { %v945_v63 = vrot.slane %v1534_v30, %v2231_v17 }
 0x1a6   :  { %v952_v34 = vmul.f32 %v945_v63, %v921_v22 }
 0x263   :  { %v617_v50 = vpop.f32.mrf.mxu1 }
 0x264   :  { %v622_v60 = vrot.slane %v617_v50, 2 }
 0x265   :  { %v1572_v15 = vpop.f32.mrf.mxu1 }
 0x266   :  { %v624_v37 = vadd.f32 %v622_v60, %v617_v50  ;;  %v908_v50 = vadd.f32 %v906_v40, %v891_v53  ;;  %v936_v60 = vmul.f32 %v932_v13, %v914_v61  ;;  %v1013_v15 = vpop.permute.xlu1 %1012  ;;  %v1073_v13 = vrot.slane %v1539_v21, %v2235_v16 }
 0x268   :  { %v625_v41 = vmax.f32 %v624_v37, 0.0  ;;  %v1011_v37 = vpop.permute.xlu0 %1010  ;;  %v938_v56 = vadd.f32 %v936_v60, %v908_v50 }
 0x269   :  { %v1014_v32 = vsel %vm1007_vm1, %v1011_v37, %v1013_v15 }
 0x26a   :  { %v1243_v28 = vrot.slane %v625_v41, %v2231_v17  ;;  %v1266_v10 = vrot.slane %v625_v41, %v2235_v16  ;;  %v1394_v35 = vrot.slane %v625_v41, %v1393_v42  ;;  %v1417_v4 = vrot.slane %v625_v41, %v1416_v20 }
 0x26b   :  { %v949_v41 = vrot.slane %v1534_v30, %v2235_v16  ;;  %v1540_v30 = vld [vmem:[%s2695_s4 + $0x16] ss:$8 sm:$0x3] }
 0x26c   :  { %1249 = vbcast.lane.b32.xlu1 %v1243_v28, 264  ;;  %1245 = vbcast.lane.b32.xlu0 %v1243_v28, 256  ;;  %v1051_v46 = vpop.permute.xlu0 %1050 }
 0x270   :  { %1257 = vbcast.lane.b32.xlu1 %v1243_v28, 280  ;;  %1253 = vbcast.lane.b32.xlu0 %v1243_v28, 272  ;;  %v1058_v29 = vpop.permute.xlu0 %1057 }
 0x274   :  { %1268 = vbcast.lane.b32.xlu1 %v1266_v10, 256  ;;  %1261 = vbcast.lane.b32.xlu0 %v1243_v28, 288  ;;  %v920_v28 = vsel %vm913_vm15, %v2244_v5, %v2242_v0  ;;  %v962_v0 = vsel %vm960_vm0, %v2253_v3, %v2255_v2  ;;  %v1053_v5 = vpop.permute.xlu1 %1052  ;;  %v1098_v40 = vpop.permute.xlu0 %1097 }
 0x275   :  { %v953_v42 = vmul.f32 %v949_v41, %v920_v28  ;;  %v982_v18 = vmul.f32 %v975_v49, %v962_v0 }
 0x277   :  { %v955_v45 = vadd.f32 %v953_v42, %v938_v56  ;;  %v1120_v42 = vrot.slane %v1541_v11, %v2235_v16 }
 0x278   :  { %1276 = vbcast.lane.b32.xlu1 %v1266_v10, 272  ;;  %1272 = vbcast.lane.b32.xlu0 %v1266_v10, 264  ;;  %v1060_v26 = vpop.permute.xlu1 %1059  ;;  %v1105_v60 = vpop.permute.xlu0 %1104 }
 0x279   :  { %v1062_v56 = vsel %vm1054_vm2, %v1060_v26, %v1058_v29 }
 0x27c   :  { %1284 = vbcast.lane.b32.xlu1 %v1266_v10, 288  ;;  %1280 = vbcast.lane.b32.xlu0 %v1266_v10, 280  ;;  %v937_v10 = vadd.f32 %v935_v43, %v907_v55  ;;  %v1100_v27 = vpop.permute.xlu1 %1099  ;;  %v1055_v43 = vsel %vm1054_vm2, %v1051_v46, %v1053_v5  ;;  %v1056_v55 = vsel %vm1054_vm2, %v1053_v5, %v1051_v46  ;;  %v1542_v5 = vld [vmem:[%s2695_s4 + $0x17] ss:$8 sm:$0x3]  ;;  %v1145_v7 = vpop.permute.xlu0 %1144 }
 0x27d   :  { %v1077_v22 = vmul.f32 %v1073_v13, %v1056_v55  ;;  %v1546_v55 = vld [vmem:[%s2695_s4 + $0x21] ss:$8 sm:$0x3] }
 0x27e   :  { %v954_v48 = vadd.f32 %v952_v34, %v937_v10  ;;  %v1061_v10 = vsel %vm1054_vm2, %v1058_v29, %v1060_v26  ;;  %v1116_v34 = vrot.slane %v1541_v11, %v2231_v17 }
 0x280   :  { %1400 = vbcast.lane.b32.xlu1 %v1394_v35, 264  ;;  %1396 = vbcast.lane.b32.xlu0 %v1394_v35, 256  ;;  %v984_v51 = vadd.f32 %v982_v18, %v954_v48  ;;  %v1107_v50 = vpop.permute.xlu1 %1106  ;;  %v1102_v48 = vsel %vm1101_vm3, %v1098_v40, %v1100_v27  ;;  %v1133_v18 = vrot.slane %v1542_v5, %v2231_v17 }
 0x281   :  { %v1123_v6 = vmul.f32 %v1116_v34, %v1102_v48  ;;  %v1108_v26 = vsel %vm1101_vm3, %v1105_v60, %v1107_v50  ;;  %v1109_v29 = vsel %vm1101_vm3, %v1107_v50, %v1105_v60 }
 0x284   :  { %1408 = vbcast.lane.b32.xlu1 %v1394_v35, 280  ;;  %1404 = vbcast.lane.b32.xlu0 %v1394_v35, 272  ;;  %v1147_v46 = vpop.permute.xlu1 %1146 }
 0x288   :  { %1419 = vbcast.lane.b32.xlu1 %v1417_v4, 256  ;;  %1412 = vbcast.lane.b32.xlu0 %v1394_v35, 288  ;;  %v961_v35 = vsel %vm960_vm0, %v2255_v2, %v2253_v3  ;;  %v968_v3 = vsel %vm960_vm0, %v966_v57, %v964_v33  ;;  %v1537_v2 = vld [vmem:[%s2695_s4 + $0x3] ss:$8 sm:$0x3]  ;;  %v1008_v33 = vsel %vm1007_vm1, %v1004_v25, %v1006_v44 }
 0x289   :  { %v983_v20 = vmul.f32 %v979_v36, %v961_v35  ;;  %v999_v23 = vmul.f32 %v992_v24, %v968_v3  ;;  %v1026_v9 = vrot.slane %v1537_v2, %v2235_v16  ;;  %v1538_v57 = vld [vmem:[%s2695_s4 + $0x14] ss:$8 sm:$0x3]  ;;  %v1015_v44 = vsel %vm1007_vm1, %v1013_v15, %v1011_v37 }
 0x28a   :  { %v1039_v54 = vrot.slane %v1538_v57, %v2231_v17  ;;  %v1043_v47 = vrot.slane %v1538_v57, %v2235_v16  ;;  %v1069_v25 = vrot.slane %v1539_v21, %v2231_v17  ;;  %v1086_v15 = vrot.slane %v1540_v30, %v2231_v17 }
 0x28b   :  { %v985_v12 = vadd.f32 %v983_v20, %v955_v45  ;;  %v1001_v59 = vadd.f32 %v999_v23, %v984_v51  ;;  %v1030_v19 = vmul.f32 %v1026_v9, %v1008_v33  ;;  %v1090_v37 = vrot.slane %v1540_v30, %v2235_v16  ;;  %v1154_v51 = vpop.permute.xlu1 %1153 }
 0x28c   :  { %1427 = vbcast.lane.b32.xlu1 %v1417_v4, 272  ;;  %1423 = vbcast.lane.b32.xlu0 %v1417_v4, 264  ;;  %v1046_v31 = vmul.f32 %v1039_v54, %v1015_v44  ;;  %v1047_v61 = vmul.f32 %v1043_v47, %v1014_v32  ;;  %v1076_v28 = vmul.f32 %v1069_v25, %v1055_v43  ;;  %v1545_v32 = vld [vmem:[%s2695_s4 + $0x10] ss:$8 sm:$0x3] }
 0x28d   :  { %v1002_v62 = vadd.f32 %v1000_v39, %v985_v12  ;;  %v1093_v35 = vmul.f32 %v1086_v15, %v1061_v10  ;;  %v1094_v0 = vmul.f32 %v1090_v37, %v1062_v56  ;;  %v1103_v45 = vsel %vm1101_vm3, %v1100_v27, %v1098_v40  ;;  %v1152_v12 = vpop.permute.xlu0 %1151 }
 0x28e   :  { %v1137_v20 = vrot.slane %v1542_v5, %v2235_v16  ;;  %v1124_v3 = vmul.f32 %v1120_v42, %v1103_v45  ;;  %v1140_v57 = vmul.f32 %v1133_v18, %v1108_v26  ;;  %v1149_v54 = vsel %vm1148_vm4, %v1145_v7, %v1147_v46 }
 0x28f   :  { %v1032_v53 = vadd.f32 %v1030_v19, %v1002_v62  ;;  %v1150_v47 = vsel %vm1148_vm4, %v1147_v46, %v1145_v7  ;;  %v1194_v40 = vpop.permute.xlu1 %1193  ;;  %v1155_v25 = vsel %vm1148_vm4, %v1152_v12, %v1154_v51  ;;  %v1156_v13 = vsel %vm1148_vm4, %v1154_v51, %v1152_v12  ;;  %v1584_v51 = vld [vmem:[%s2692_s1 + $0x10] sm:$0xff] }
 0x290   :  { %1435 = vbcast.lane.b32.xlu1 %v1417_v4, 288  ;;  %1431 = vbcast.lane.b32.xlu0 %v1417_v4, 280  ;;  %v1022_v4 = vrot.slane %v1537_v2, %v2231_v17  ;;  %v1543_v2 = vld [vmem:[%s2695_s4 + $0x7] ss:$8 sm:$0x3]  ;;  %v1141_v33 = vmul.f32 %v1137_v20, %v1109_v29 }
 0x291   :  { %v1049_v41 = vadd.f32 %v1047_v61, %v1032_v53  ;;  %v1163_v23 = vrot.slane %v1543_v2, %v2231_v17  ;;  %v1167_v39 = vrot.slane %v1543_v2, %v2235_v16  ;;  %v1192_v44 = vpop.permute.xlu0 %1191  ;;  %v1214_v53 = vrot.slane %v1545_v32, %v2235_v16 }
 0x292   :  { %v1029_v52 = vmul.f32 %v1022_v4, %v1009_v14  ;;  %v1544_v14 = vld [vmem:[%s2695_s4 + $0x20] ss:$8 sm:$0x3]  ;;  %v1196_v50 = vsel %vm1195_vm5, %v1192_v44, %v1194_v40  ;;  %v1197_v60 = vsel %vm1195_vm5, %v1194_v40, %v1192_v44 }
 0x293   :  { %v1079_v36 = vadd.f32 %v1077_v22, %v1049_v41  ;;  %v1184_v62 = vrot.slane %v1544_v14, %v2235_v16  ;;  %v1170_v21 = vmul.f32 %v1163_v23, %v1149_v54  ;;  %v1171_v27 = vmul.f32 %v1167_v39, %v1150_v47  ;;  %v1201_v15 = vpop.permute.xlu1 %1200  ;;  %v1586_v39 = vld [vmem:[%s2692_s1] sm:$0xff] }
 0x294   :  { %v1031_v58 = vadd.f32 %v1029_v52, %v1001_v59  ;;  %v1180_v59 = vrot.slane %v1544_v14, %v2231_v17  ;;  %v1231_v41 = vrot.slane %v1546_v55, %v2235_v16  ;;  %v1218_v10 = vmul.f32 %v1214_v53, %v1197_v60  ;;  %v1592_v60 = vld [vmem:[%s2692_s1 + $0x50] sm:$0xff] }
 0x295   :  { %v1096_v1 = vadd.f32 %v1094_v0, %v1079_v36  ;;  %v1188_v43 = vmul.f32 %v1184_v62, %v1156_v13  ;;  %v1199_v37 = vpop.permute.xlu0 %1198  ;;  %v1634_v0 = vmov 1966171168  }
 0x296   :  { %v1048_v63 = vadd.f32 %v1046_v31, %v1031_v58  ;;  %v1210_v58 = vrot.slane %v1545_v32, %v2231_v17  ;;  %v1187_v30 = vmul.f32 %v1180_v59, %v1155_v25  ;;  %v1202_v56 = vsel %vm1195_vm5, %v1199_v37, %v1201_v15  ;;  %v1590_v32 = vld [vmem:[%s2692_s1 + $0x20] sm:$0xff]  ;;  %v1591_v25 = vld [vmem:[%s2692_s1 + $0x28] sm:$0xff] }
 0x297   :  { %v1126_v9 = vadd.f32 %v1124_v3, %v1096_v1  ;;  %v1203_v34 = vsel %vm1195_vm5, %v1201_v15, %v1199_v37  ;;  %v1310_v5 = vunpack.c.l.s4 %v1634_v0  ;;  %v1593_v37 = vld [vmem:[%s2692_s1 + $0x58] sm:$0xff] }
 0x298   :  { %v1078_v49 = vadd.f32 %v1076_v28, %v1048_v63  ;;  %v1227_v63 = vrot.slane %v1546_v55, %v2231_v17  ;;  %v1217_v11 = vmul.f32 %v1210_v58, %v1196_v50 }
 0x299   :  { %v1143_v19 = vadd.f32 %v1141_v33, %v1126_v9  ;;  %v1311_v48 = vunpack.c.0.s8 %v1310_v5  ;;  %v1587_v9 = vld [vmem:[%s2692_s1 + $0x8] sm:$0xff]  ;;  %v1597_v5 = vld [vmem:[%s2692_s1 + $0x78] sm:$0xff] }
 0x29a   :  { %v1095_v24 = vadd.f32 %v1093_v35, %v1078_v49  ;;  %v1234_v36 = vmul.f32 %v1227_v63, %v1202_v56  ;;  %v1235_v35 = vmul.f32 %v1231_v41, %v1203_v34  ;;  %v1594_v41 = vld [vmem:[%s2692_s1 + $0x40] sm:$0xff] }
 0x29b   :  { %v1173_v61 = vadd.f32 %v1171_v27, %v1143_v19  ;;  %v1314_v20 = vsub.s32 %v1311_v48, %v2776_v38  ;;  %v1585_v38 = vld [vmem:[%s2692_s1 + $0x18] sm:$0xff]  ;;  %v1588_v19 = vld [vmem:[%s2692_s1 + $0x30] sm:$0xff] }
 0x29c   :  { %v1125_v4 = vadd.f32 %v1123_v6, %v1095_v24  ;;  %v1589_v27 = vld [vmem:[%s2692_s1 + $0x38] sm:$0xff] }
 0x29d   :  { %v1190_v22 = vadd.f32 %v1188_v43, %v1173_v61 }
 0x29e   :  { %v1142_v52 = vadd.f32 %v1140_v57, %v1125_v4 }
 0x29f   :  { %v1220_v49 = vadd.f32 %v1218_v10, %v1190_v22  ;;  %v1595_v22 = vld [vmem:[%s2692_s1 + $0x48] sm:$0xff] }
 0x2a0   :  { %v1172_v31 = vadd.f32 %v1170_v21, %v1142_v52 }
 0x2a1   :  { %v1237_v7 = vadd.f32 %v1235_v35, %v1220_v49  ;;  %v1596_v35 = vld [vmem:[%s2692_s1 + $0x70] sm:$0xff] }
 0x2a2   :  { %v1189_v28 = vadd.f32 %v1187_v30, %v1172_v31 }
 0x2a3   :  { %v1239_v18 = vmax.f32 %v1237_v7, 0.0  ;;  %v1598_v7 = vld [vmem:[%s2692_s1 + $0x60] sm:$0xff] }
 0x2a4   :  { %v1219_v42 = vadd.f32 %v1217_v11, %v1189_v28 }
 0x2a6   :  { %v1236_v46 = vadd.f32 %v1234_v36, %v1219_v42 }
 0x2a8   :  { %v1238_v45 = vmax.f32 %v1236_v46, 0.0 }
 0x2aa   :  { %v1308_v24 = vcombine.low %v1238_v45, %v1239_v18  ;;  %v1599_v45 = vld [vmem:[%s2692_s1 + $0x68] sm:$0xff] }
 0x2ac   :  { %v1315_v1 = vrot.slane %v1308_v24, %v1314_v20 }
 0x2ae   :  { %v2431_v6 = vrot.slane %v1315_v1, %v1314_v20  ;;  %v1316_v3 = vcombine.high %v1315_v1, %v1315_v1 }
 0x2b0   :  { %v1334_v8 = vrot.slane %v2431_v6, %v2231_v17  ;;  %v1338_v2 = vrot.slane %v2431_v6, %v2235_v16  ;;  %v2449_v59 = vrot.slane %v1316_v3, %v1314_v20 }
 0x2b2   :  { %v1342_v43 = vrot.slane %v2449_v59, %v2231_v17  ;;  %v1346_v55 = vrot.slane %v2449_v59, %v2235_v16 }
 0x2de   :  { %v1250_v26 = vpop.permute.xlu1 %1249  ;;  %v1246_v29 = vpop.permute.xlu0 %1245 }
 0x2df   :  { %v1288_v12 = vmul.f32 %v1584_v51, %v1250_v26  ;;  %v1289_v23 = vmul.f32 %v1585_v38, %v1250_v26  ;;  %v1286_v4 = vmul.f32 %v1586_v39, %v1246_v29  ;;  %v1287_v57 = vmul.f32 %v1587_v9, %v1246_v29  ;;  %v1601_v51 = vld [vmem:[%s2692_s1 + $0x98] sm:$0xff]  ;;  %v1602_v38 = vld [vmem:[%s2692_s1 + $0x80] sm:$0xff]  ;;  %v1603_v39 = vld [vmem:[%s2692_s1 + $0x88] sm:$0xff] }
 0x2e1   :  { %v1353_v33 = vmul.f32 %v1334_v8, %v1288_v12  ;;  %v1354_v14 = vmul.f32 %v1338_v2, %v1289_v23  ;;  %v1351_v54 = vmul.f32 %v1334_v8, %v1286_v4  ;;  %v1352_v47 = vmul.f32 %v1338_v2, %v1287_v57 }
 0x2e2   :  { %v1258_v62 = vpop.permute.xlu1 %1257  ;;  %v1254_v52 = vpop.permute.xlu0 %1253 }
 0x2e3   :  { %1373 = vst [vmem:[%s2696_s6 + $0x10] sm:$0xff] %v1353_v33  ;;  %1374 = vst [vmem:[%s2696_s6 + $0x18] sm:$0xff] %v1354_v14  ;;  %v1292_v21 = vmul.f32 %v1588_v19, %v1258_v62  ;;  %v1293_v40 = vmul.f32 %v1589_v27, %v1258_v62  ;;  %v1290_v44 = vmul.f32 %v1590_v32, %v1254_v52  ;;  %v1604_v19 = vld [vmem:[%s2691_s0 + $0x10] sm:$0xff]  ;;  %v1605_v27 = vld [vmem:[%s2691_s0 + $0x18] sm:$0xff] }
 0x2e4   :  { %1371 = vst [vmem:[%s2696_s6] sm:$0xff] %v1351_v54  ;;  %1372 = vst [vmem:[%s2696_s6 + $0x8] sm:$0xff] %v1352_v47  ;;  %v1291_v13 = vmul.f32 %v1591_v25, %v1254_v52  ;;  %v1606_v32 = vld [vmem:[%s2691_s0] sm:$0xff]  ;;  %v1607_v25 = vld [vmem:[%s2691_s0 + $0x8] sm:$0xff] }
 0x2e5   :  { %v1357_v58 = vmul.f32 %v1334_v8, %v1292_v21  ;;  %v1358_v53 = vmul.f32 %v1338_v2, %v1293_v40  ;;  %v1355_v31 = vmul.f32 %v1334_v8, %v1290_v44 }
 0x2e6   :  { %v1356_v61 = vmul.f32 %v1338_v2, %v1291_v13  ;;  %v1269_v30 = vpop.permute.xlu1 %1268  ;;  %v1262_v50 = vpop.permute.xlu0 %1261 }
 0x2e7   :  { %1377 = vst [vmem:[%s2696_s6 + $0x30] sm:$0xff] %v1357_v58  ;;  %1378 = vst [vmem:[%s2696_s6 + $0x38] sm:$0xff] %v1358_v53  ;;  %v1296_v15 = vmul.f32 %v1592_v60, %v1269_v30  ;;  %v1297_v63 = vmul.f32 %v1593_v37, %v1269_v30  ;;  %v1294_v28 = vmul.f32 %v1594_v41, %v1262_v50  ;;  %v1609_v60 = vld [vmem:[%s2691_s0 + $0x38] sm:$0xff]  ;;  %v1610_v37 = vld [vmem:[%s2691_s0 + $0x20] sm:$0xff] }
 0x2e8   :  { %1375 = vst [vmem:[%s2696_s6 + $0x20] sm:$0xff] %v1355_v31  ;;  %1376 = vst [vmem:[%s2696_s6 + $0x28] sm:$0xff] %v1356_v61  ;;  %v1295_v11 = vmul.f32 %v1595_v22, %v1262_v50  ;;  %v1458_v30 = vcombine.high %v2449_v59, %v2449_v59  ;;  %v1608_v59 = vld [vmem:[%s2691_s0 + $0x30] sm:$0xff]  ;;  %v1611_v41 = vld [vmem:[%s2691_s0 + $0x28] sm:$0xff] }
 0x2e9   :  { %v1361_v10 = vmul.f32 %v1342_v43, %v1296_v15  ;;  %v1362_v56 = vmul.f32 %v1346_v55, %v1297_v63  ;;  %v1359_v34 = vmul.f32 %v1334_v8, %v1294_v28  ;;  %v1457_v8 = vcombine.high %v2431_v6, %v2431_v6  ;;  %v1600_v6 = vld [vmem:[%s2692_s1 + $0x90] sm:$0xff] }
 0x2ea   :  { %v1360_v42 = vmul.f32 %v1338_v2, %v1295_v11  ;;  %v1277_v49 = vpop.permute.xlu1 %1276  ;;  %v1273_v36 = vpop.permute.xlu0 %1272 }
 0x2eb   :  { %1381 = vst [vmem:[%s2696_s6 + $0x50] sm:$0xff] %v1361_v10  ;;  %1382 = vst [vmem:[%s2696_s6 + $0x58] sm:$0xff] %v1362_v56  ;;  %v1300_v0 = vmul.f32 %v1596_v35, %v1277_v49  ;;  %v1301_v46 = vmul.f32 %v1597_v5, %v1277_v49  ;;  %v1298_v48 = vmul.f32 %v1598_v7, %v1273_v36  ;;  %v1613_v35 = vld [vmem:[%s2691_s0 + $0x58] sm:$0xff]  ;;  %v1614_v5 = vld [vmem:[%s2691_s0 + $0x40] sm:$0xff] }
 0x2ec   :  { %1379 = vst [vmem:[%s2696_s6 + $0x40] sm:$0xff] %v1359_v34  ;;  %1380 = vst [vmem:[%s2696_s6 + $0x48] sm:$0xff] %v1360_v42  ;;  %v1299_v18 = vmul.f32 %v1599_v45, %v1273_v36  ;;  %v1462_v47 = vrot.slane %v1457_v8, %v2231_v17  ;;  %v1466_v62 = vrot.slane %v1457_v8, %v2235_v16  ;;  %v1615_v7 = vld [vmem:[%s2691_s0 + $0x48] sm:$0xff]  ;;  %v1616_v8 = vld [vmem:[%s2691_s0 + $0x70] sm:$0xff] }
 0x2ed   :  { %v1365_v20 = vmul.f32 %v1342_v43, %v1300_v0  ;;  %v1366_v24 = vmul.f32 %v1346_v55, %v1301_v46  ;;  %v1363_v1 = vmul.f32 %v1342_v43, %v1298_v48  ;;  %v1470_v42 = vrot.slane %v1458_v30, %v2231_v17  ;;  %v1612_v17 = vld [vmem:[%s2691_s0 + $0x50] sm:$0xff] }
 0x2ee   :  { %v1364_v3 = vmul.f32 %v1346_v55, %v1299_v18  ;;  %v1285_v2 = vpop.permute.xlu1 %1284  ;;  %v1281_v26 = vpop.permute.xlu0 %1280  ;;  %v1474_v49 = vrot.slane %v1458_v30, %v2235_v16 }
 0x2ef   :  { %1385 = vst [vmem:[%s2696_s6 + $0x70] sm:$0xff] %v1365_v20  ;;  %1386 = vst [vmem:[%s2696_s6 + $0x78] sm:$0xff] %v1366_v24  ;;  %v1304_v29 = vmul.f32 %v1600_v6, %v1285_v2  ;;  %v1305_v12 = vmul.f32 %v1601_v51, %v1285_v2  ;;  %v1302_v23 = vmul.f32 %v1602_v38, %v1281_v26 }
 0x2f0   :  { %1383 = vst [vmem:[%s2696_s6 + $0x60] sm:$0xff] %v1363_v1  ;;  %1384 = vst [vmem:[%s2696_s6 + $0x68] sm:$0xff] %v1364_v3  ;;  %v1303_v4 = vmul.f32 %v1603_v39, %v1281_v26  ;;  %v1617_v26 = vld [vmem:[%s2691_s0 + $0x78] sm:$0xff] }
 0x2f1   :  { %v1369_v9 = vmul.f32 %v1342_v43, %v1304_v29  ;;  %v1370_v57 = vmul.f32 %v1346_v55, %v1305_v12  ;;  %v1367_v33 = vmul.f32 %v1342_v43, %v1302_v23  ;;  %v1618_v29 = vld [vmem:[%s2691_s0 + $0x60] sm:$0xff]  ;;  %v1619_v12 = vld [vmem:[%s2691_s0 + $0x68] sm:$0xff] }
 0x2f2   :  { %v1368_v14 = vmul.f32 %v1346_v55, %v1303_v4  ;;  %v1401_v54 = vpop.permute.xlu1 %1400  ;;  %v1397_v52 = vpop.permute.xlu0 %1396 }
 0x2f3   :  { %1389 = vst [vmem:[%s2696_s6 + $0x90] sm:$0xff] %v1369_v9  ;;  %1390 = vst [vmem:[%s2696_s6 + $0x98] sm:$0xff] %v1370_v57  ;;  %v1439_v21 = vmul.f32 %v1604_v19, %v1401_v54  ;;  %v1440_v40 = vmul.f32 %v1605_v27, %v1401_v54  ;;  %v1437_v44 = vmul.f32 %v1606_v32, %v1397_v52 }
 0x2f4   :  { %1387 = vst [vmem:[%s2696_s6 + $0x80] sm:$0xff] %v1367_v33  ;;  %1388 = vst [vmem:[%s2696_s6 + $0x88] sm:$0xff] %v1368_v14  ;;  %v1438_v13 = vmul.f32 %v1607_v25, %v1397_v52  ;;  %v1620_v14 = vld [vmem:[%s2691_s0 + $0x90] sm:$0xff]  ;;  %v1622_v52 = vld [vmem:[%s2691_s0 + $0x80] sm:$0xff] }
 0x2f5   :  { %v1481_v58 = vmul.f32 %v1462_v47, %v1439_v21  ;;  %v1482_v53 = vmul.f32 %v1466_v62, %v1440_v40  ;;  %v1479_v31 = vmul.f32 %v1462_v47, %v1437_v44  ;;  %v1623_v21 = vld [vmem:[%s2691_s0 + $0x88] sm:$0xff] }
 0x2f6   :  { %v1480_v61 = vmul.f32 %v1466_v62, %v1438_v13  ;;  %v1409_v43 = vpop.permute.xlu1 %1408  ;;  %v1405_v55 = vpop.permute.xlu0 %1404 }
 0x2f7   :  { %1501 = vst [vmem:[%s2697_s5 + $0x10] sm:$0xff] %v1481_v58  ;;  %1502 = vst [vmem:[%s2697_s5 + $0x18] sm:$0xff] %v1482_v53  ;;  %v1443_v50 = vmul.f32 %v1608_v59, %v1409_v43  ;;  %v1444_v15 = vmul.f32 %v1609_v60, %v1409_v43  ;;  %v1441_v63 = vmul.f32 %v1610_v37, %v1405_v55 }
 0x2f8   :  { %1499 = vst [vmem:[%s2697_s5] sm:$0xff] %v1479_v31  ;;  %1500 = vst [vmem:[%s2697_s5 + $0x8] sm:$0xff] %v1480_v61  ;;  %v1442_v28 = vmul.f32 %v1611_v41, %v1405_v55 }
 0x2f9   :  { %v1485_v22 = vmul.f32 %v1462_v47, %v1443_v50  ;;  %v1486_v11 = vmul.f32 %v1466_v62, %v1444_v15  ;;  %v1483_v10 = vmul.f32 %v1462_v47, %v1441_v63 }
 0x2fa   :  { %v1484_v56 = vmul.f32 %v1466_v62, %v1442_v28  ;;  %v1420_v34 = vpop.permute.xlu1 %1419  ;;  %v1413_v36 = vpop.permute.xlu0 %1412 }
 0x2fb   :  { %1505 = vst [vmem:[%s2697_s5 + $0x30] sm:$0xff] %v1485_v22  ;;  %1506 = vst [vmem:[%s2697_s5 + $0x38] sm:$0xff] %v1486_v11  ;;  %v1447_v16 = vmul.f32 %v1612_v17, %v1420_v34  ;;  %v1448_v0 = vmul.f32 %v1613_v35, %v1420_v34  ;;  %v1445_v46 = vmul.f32 %v1614_v5, %v1413_v36 }
 0x2fc   :  { %1503 = vst [vmem:[%s2697_s5 + $0x20] sm:$0xff] %v1483_v10  ;;  %1504 = vst [vmem:[%s2697_s5 + $0x28] sm:$0xff] %v1484_v56  ;;  %v1446_v48 = vmul.f32 %v1615_v7, %v1413_v36 }
 0x2fd   :  { %v1489_v45 = vmul.f32 %v1470_v42, %v1447_v16  ;;  %v1490_v18 = vmul.f32 %v1474_v49, %v1448_v0  ;;  %v1487_v20 = vmul.f32 %v1462_v47, %v1445_v46  ;;  %v1621_v47 = vld [vmem:[%s2691_s0 + $0x98] sm:$0xff] }
 0x2fe   :  { %v1488_v24 = vmul.f32 %v1466_v62, %v1446_v48  ;;  %v1428_v1 = vpop.permute.xlu1 %1427  ;;  %v1424_v3 = vpop.permute.xlu0 %1423 }
 0x2ff   :  { %1509 = vst [vmem:[%s2697_s5 + $0x50] sm:$0xff] %v1489_v45  ;;  %1510 = vst [vmem:[%s2697_s5 + $0x58] sm:$0xff] %v1490_v18  ;;  %v1451_v2 = vmul.f32 %v1616_v8, %v1428_v1  ;;  %v1452_v6 = vmul.f32 %v1617_v26, %v1428_v1  ;;  %v1449_v51 = vmul.f32 %v1618_v29, %v1424_v3 }
 0x300   :  { %1507 = vst [vmem:[%s2697_s5 + $0x40] sm:$0xff] %v1487_v20  ;;  %1508 = vst [vmem:[%s2697_s5 + $0x48] sm:$0xff] %v1488_v24  ;;  %v1450_v38 = vmul.f32 %v1619_v12, %v1424_v3 }
 0x301   :  { %v1493_v23 = vmul.f32 %v1470_v42, %v1451_v2  ;;  %v1494_v39 = vmul.f32 %v1474_v49, %v1452_v6  ;;  %v1491_v4 = vmul.f32 %v1470_v42, %v1449_v51 }
 0x302   :  { %v1492_v9 = vmul.f32 %v1474_v49, %v1450_v38  ;;  %v1436_v57 = vpop.permute.xlu1 %1435  ;;  %v1432_v33 = vpop.permute.xlu0 %1431 }
 0x303   :  { %1513 = vst [vmem:[%s2697_s5 + $0x70] sm:$0xff] %v1493_v23  ;;  %1514 = vst [vmem:[%s2697_s5 + $0x78] sm:$0xff] %v1494_v39  ;;  %v1455_v54 = vmul.f32 %v1620_v14, %v1436_v57  ;;  %v1456_v62 = vmul.f32 %v1621_v47, %v1436_v57  ;;  %v1453_v19 = vmul.f32 %v1622_v52, %v1432_v33 }
 0x304   :  { %1511 = vst [vmem:[%s2697_s5 + $0x60] sm:$0xff] %v1491_v4  ;;  %1512 = vst [vmem:[%s2697_s5 + $0x68] sm:$0xff] %v1492_v9  ;;  %v1454_v27 = vmul.f32 %v1623_v21, %v1432_v33 }
 0x305   :  { %v1497_v40 = vmul.f32 %v1470_v42, %v1455_v54  ;;  %v1498_v32 = vmul.f32 %v1474_v49, %v1456_v62  ;;  %v1495_v44 = vmul.f32 %v1470_v42, %v1453_v19 }
 0x306   :  { %v1496_v25 = vmul.f32 %v1474_v49, %v1454_v27 }
 0x307   :  { %1517 = vst [vmem:[%s2697_s5 + $0x90] sm:$0xff] %v1497_v40  ;;  %1518 = vst [vmem:[%s2697_s5 + $0x98] sm:$0xff] %v1498_v32 }
 0x308   :  { %1515 = vst [vmem:[%s2697_s5 + $0x80] sm:$0xff] %v1495_v44  ;;  %1516 = vst [vmem:[%s2697_s5 + $0x88] sm:$0xff] %v1496_v25 }

</bundles_post_ra>
